<compile_context>
chip_gen: v6e
topology: v6e:2x2x1
jax: 0.10.0
libtpu: 0.0.40
codegen_flags: <defaults>
</compile_context>

<pallas_src>
import functools

import jax
import jax.numpy as jnp
from jax.experimental import pallas as pl
from jax.experimental.pallas import tpu as pltpu

BN_EPS = 1e-5


def _conv1x1(w, b, a):
    """w: (Cout, Cin), b: (Cout, 1), a: (Nb, Cin, TM) -> (Nb, Cout, TM).

    Unrolled VPU broadcast-FMA over Cin; exact f32, no MXU precision ambiguity.
    """
    c_in = w.shape[1]
    y = w[None, :, 0:1] * a[:, 0:1, :]
    for ci in range(1, c_in):
        y = y + w[None, :, ci:ci + 1] * a[:, ci:ci + 1, :]
    return y + b[None, :, :]


def _make_stats_kernel(num_layers, m_total, hw_real, tm, eps):
    """Grid (num_layers passes, batch blocks, HW tiles); outputs folded conv params."""
    inv_m = 1.0 / float(m_total)
    need_mask = (hw_real % tm) != 0  # padded H*W tail must not contribute to stats

    def kernel(*refs):
        x_ref = refs[0]
        w_refs = [refs[1 + 4 * l + 0] for l in range(num_layers)]
        b_refs = [refs[1 + 4 * l + 1] for l in range(num_layers)]
        g_refs = [refs[1 + 4 * l + 2] for l in range(num_layers)]
        bt_refs = [refs[1 + 4 * l + 3] for l in range(num_layers)]
        out_base = 1 + 4 * num_layers
        wf_refs = [refs[out_base + 2 * l + 0] for l in range(num_layers)]   # folded W
        bf_refs = [refs[out_base + 2 * l + 1] for l in range(num_layers)]   # folded b
        stat_base = out_base + 2 * num_layers
        sum_refs = [refs[stat_base + 2 * l + 0] for l in range(num_layers)]
        sq_refs = [refs[stat_base + 2 * l + 1] for l in range(num_layers)]

        p = pl.program_id(0)    # pass / layer index
        nb = pl.program_id(1)   # batch-block index
        t = pl.program_id(2)    # H*W tile index
        last_nb = pl.num_programs(1) - 1
        last_t = pl.num_programs(2) - 1
        first_step_of_pass = (nb == 0) & (t == 0)

        @pl.when((p == 0) & first_step_of_pass)
        def _init():
            for l in range(num_layers):
                sum_refs[l][...] = jnp.zeros_like(sum_refs[l])
                sq_refs[l][...] = jnp.zeros_like(sq_refs[l])

        def finalize(l):
            # Fold BN (training-mode batch stats, biased variance) into layer l's conv.
            mean = sum_refs[l][...] * inv_m                      # (Cout, 1)
            var = sq_refs[l][...] * inv_m - mean * mean
            s = g_refs[l][...] * jax.lax.rsqrt(jnp.maximum(var, 0.0) + eps)
            wf_refs[l][...] = s * w_refs[l][...]                 # (Cout, Cin)
            bf_refs[l][...] = s * (b_refs[l][...] - mean) + bt_refs[l][...]

        # Hoisted per-pass scalar work: layer l's stats are complete when pass l+1
        # starts -> fold once and keep the folded params VMEM-resident (they are the
        # kernel outputs, constant block index => resident for the whole grid).
        for l in range(num_layers - 1):
            @pl.when((p == l + 1) & first_step_of_pass)
            def _(l=l):
                finalize(l)

        x = x_ref[...].astype(jnp.float32)   # (Nb, Cin, TM), lane-dense along TM

        if need_mask:
            lane = jax.lax.broadcasted_iota(jnp.int32, (1, 1, tm), 2)
            valid = (t * tm + lane) < hw_real

        # Pass l: accumulate per-channel sum / sum-of-squares of layer l's conv output,
        # re-deriving the already-normalized prefix from x via the folded convs.
        for l in range(num_layers):
            @pl.when(p == l)
            def _(l=l):
                a = x
                for j in range(l):
                    a = jnp.maximum(_conv1x1(wf_refs[j][...], bf_refs[j][...], a), 0.0)
                y = _conv1x1(w_refs[l][...], b_refs[l][...], a)
                if need_mask:
                    y_s = jnp.where(valid, y, 0.0)
                    y_q = jnp.where(valid, y * y, 0.0)
                else:
                    y_s, y_q = y, y * y
                sum_refs[l][...] += jnp.sum(jnp.sum(y_s, axis=0), axis=-1, keepdims=True)
                sq_refs[l][...] += jnp.sum(jnp.sum(y_q, axis=0), axis=-1, keepdims=True)

        # Last layer's stats are only complete at the very last grid step.
        @pl.when((p == num_layers - 1) & (nb == last_nb) & (t == last_t))
        def _final():
            finalize(num_layers - 1)

    return kernel


def _make_forward_kernel(num_layers):
    """Pure folded-conv + ReLU chain; every grid step is independent (megacore-able)."""

    def kernel(*refs):
        x_ref = refs[0]
        wf_refs = [refs[1 + 2 * l + 0] for l in range(num_layers)]
        bf_refs = [refs[1 + 2 * l + 1] for l in range(num_layers)]
        o_ref = refs[1 + 2 * num_layers]

        a = x_ref[...].astype(jnp.float32)                       # (Nb, Cin, TM)
        for l in range(num_layers):
            a = jnp.maximum(_conv1x1(wf_refs[l][...], bf_refs[l][...], a), 0.0)
        o_ref[...] = a.astype(o_ref.dtype)                       # lane-dense store

    return kernel


def _choose_tiles(n, c_in, c_max, hw_pad, budget_bytes=20 << 20):
    """Pick (batch-block Nb, HW tile TM): big, 128-aligned blocks under a VMEM budget."""
    per_lane = 2 * 4 * (c_in + c_max)   # double-buffered in+out f32 bytes / lane / batch elem
    tm_cap = max(128, min(1 << 16, (budget_bytes // per_lane) // 128 * 128))
    tm = 128
    for d in range(128, min(hw_pad, tm_cap) + 1, 128):
        if hw_pad % d == 0:
            tm = d
    nb = 1
    for cand in range(1, n + 1):
        if n % cand == 0 and cand * tm * per_lane <= budget_bytes:
            nb = cand
    return nb, tm


@jax.jit
def feature_reduction_forward(x_nchw, params):
    n, c_in, h, w_sp = x_nchw.shape
    hw = h * w_sp
    hw_pad = -(-hw // 128) * 128                      # lane-dense (unmasked) stores
    num_layers = len(params)
    c_outs = [p[0].shape[0] for p in params]
    c_last = c_outs[-1]
    c_max = max(c_outs + [c_in])

    x3 = x_nchw.reshape(n, c_in, hw).astype(jnp.float32)   # NCHW kept; no transposes
    if hw_pad != hw:
        x3 = jnp.pad(x3, ((0, 0), (0, 0), (0, hw_pad - hw)))

    nb, tm = _choose_tiles(n, c_in, c_max, hw_pad)
    n_blocks = n // nb
    n_tiles = hw_pad // tm

    # VMEM budget: double-buffered x/out blocks + tiny params + scratch; stays well
    # under v7x's 64 MiB physical VMEM (v5e/v6e have 128 MiB).
    est = nb * tm * 2 * 4 * (c_in + c_last) + (1 << 20)
    vmem_limit = int(min(48 << 20, max(8 << 20, 2 * est)))

    # ---- Kernel 1: BN statistics -> folded per-layer conv params -------------------
    flat_params = []
    stats_in_specs = [pl.BlockSpec((nb, c_in, tm), lambda p, b, t: (b, 0, t))]
    for (wc, bc, gc, btc) in params:
        for arr in (wc, bc, gc, btc):
            flat_params.append(arr)
            stats_in_specs.append(pl.BlockSpec(arr.shape, lambda p, b, t: (0, 0)))

    stats_out_shape = []
    stats_out_specs = []
    for (wc, bc, _, _) in params:
        stats_out_shape.append(jax.ShapeDtypeStruct(wc.shape, jnp.float32))
        stats_out_specs.append(pl.BlockSpec(wc.shape, lambda p, b, t: (0, 0)))
        stats_out_shape.append(jax.ShapeDtypeStruct(bc.shape, jnp.float32))
        stats_out_specs.append(pl.BlockSpec(bc.shape, lambda p, b, t: (0, 0)))

    scratch = []
    for co in c_outs:
        scratch.append(pltpu.VMEM((co, 1), jnp.float32))   # per-channel sum
        scratch.append(pltpu.VMEM((co, 1), jnp.float32))   # per-channel sum of squares

    folded = pl.pallas_call(
        _make_stats_kernel(num_layers, n * hw, hw, tm, BN_EPS),
        out_shape=tuple(stats_out_shape),
        grid_spec=pltpu.PrefetchScalarGridSpec(
            num_scalar_prefetch=0,
            grid=(num_layers, n_blocks, n_tiles),
            in_specs=stats_in_specs,
            out_specs=tuple(stats_out_specs),
            scratch_shapes=scratch,
        ),
        compiler_params=pltpu.CompilerParams(
            # BN stats are carried across the whole grid in VMEM scratch -> sequential.
            dimension_semantics=("arbitrary", "arbitrary", "arbitrary"),
            vmem_limit_bytes=vmem_limit,
        ),
    )(x3, *flat_params)

    # ---- Kernel 2: folded conv + ReLU forward (fully parallel grid) ----------------
    fwd_in_specs = [pl.BlockSpec((nb, c_in, tm), lambda b, t: (b, 0, t))]
    for arr in folded:
        fwd_in_specs.append(pl.BlockSpec(arr.shape, lambda b, t: (0, 0)))

    y3 = pl.pallas_call(
        _make_forward_kernel(num_layers),
        out_shape=jax.ShapeDtypeStruct((n, c_last, hw_pad), jnp.float32),
        grid_spec=pltpu.PrefetchScalarGridSpec(
            num_scalar_prefetch=0,
            grid=(n_blocks, n_tiles),
            in_specs=fwd_in_specs,
            out_specs=pl.BlockSpec((nb, c_last, tm), lambda b, t: (b, 0, t)),
        ),
        compiler_params=pltpu.CompilerParams(
            # Independent tiles: lets v7x's two TensorCores split the dominant pass.
            dimension_semantics=("parallel", "parallel"),
            vmem_limit_bytes=vmem_limit,
        ),
    )(x3, *folded)

    return y3[:, :, :hw].reshape(n, c_last, h, w_sp)


class FeatureReductionPallas:
    """JAX/Pallas port of models/GRL/DomainClassifier.py::FeatureReduction (forward only)."""

    def __init__(self, bottleneck_channel, ch_out, key):
        self.params = []
        ch_in = bottleneck_channel
        for c in ch_out:
            key, kw, kb = jax.random.split(key, 3)
            # Conv2d(ch_in, c, kernel_size=1): weight (c, ch_in) == PyTorch OIHW squeezed.
            bound = 1.0 / (ch_in ** 0.5)
            w = jax.random.uniform(kw, (c, ch_in), jnp.float32, -bound, bound)
            b = jax.random.uniform(kb, (c, 1), jnp.float32, -bound, bound)
            gamma = jnp.ones((c, 1), jnp.float32)    # BatchNorm2d default init
            beta = jnp.zeros((c, 1), jnp.float32)
            self.params.append((w, b, gamma, beta))
            ch_in = c

    def __call__(self, x_nchw):
        return feature_reduction_forward(x_nchw, self.params)

    # TODO(synk): BatchNorm2d running_mean/running_var buffer updates (stateful side
    # effect of the PyTorch module) are not reproduced; only the forward output is.


def _reference_forward(x_nchw, params, eps=BN_EPS):
    """Pure-jnp reference (no dot ops, exact f32) of the PyTorch training-mode forward."""
    y = x_nchw
    for (w, b, g, bt) in params:
        y = jnp.sum(w[None, :, :, None, None] * y[:, None, :, :, :], axis=2) \
            + b.reshape(1, -1, 1, 1)
        mean = jnp.mean(y, axis=(0, 2, 3), keepdims=True)
        var = jnp.mean((y - mean) ** 2, axis=(0, 2, 3), keepdims=True)  # biased
        y = (y - mean) * jax.lax.rsqrt(var + eps)
        y = y * g.reshape(1, -1, 1, 1) + bt.reshape(1, -1, 1, 1)
        y = jnp.maximum(y, 0.0)
    return y


if __name__ == "__main__":
    key = jax.random.PRNGKey(0)
    key, kx, kp = jax.random.split(key, 3)

    bottleneck_channel = 4
    ch_out = (8, 16)  # two (conv1x1 -> BN -> ReLU) blocks

    x = jax.random.normal(kx, (2, bottleneck_channel, 16, 16), jnp.float32)  # NCHW

    model = FeatureReductionPallas(bottleneck_channel, ch_out, kp)
    y = jax.block_until_ready(model(x))

    assert y.shape == (2, ch_out[-1], 16, 16), y.shape

    y_ref = jax.block_until_ready(_reference_forward(x, model.params))
    max_err = float(jnp.max(jnp.abs(y - y_ref)))
    assert max_err < 1e-3, f"max abs error vs reference: {max_err}"
    assert bool(jnp.all(y >= 0.0))            # ReLU output is non-negative
    assert bool(jnp.all(jnp.isfinite(y)))
    print("KERNEL_OK")
</pallas_src>

<mosaic_0001>
module attributes {stable_mosaic.version = 11 : i64} {
  func.func @kernel(%arg0: i32, %arg1: i32, %arg2: memref<2x4x256xf32, #tpu.memory_space<vmem>>, %arg3: memref<8x4xf32, #tpu.memory_space<vmem>>, %arg4: memref<8x1xf32, #tpu.memory_space<vmem>>, %arg5: memref<16x8xf32, #tpu.memory_space<vmem>>, %arg6: memref<16x1xf32, #tpu.memory_space<vmem>>, %arg7: memref<2x16x256xf32, #tpu.memory_space<vmem>>) attributes {dimension_semantics = [#tpu.dimension_semantics<parallel>, #tpu.dimension_semantics<parallel>], iteration_bounds = array<i64: 1, 1>, scalar_prefetch = 0 : i64, scratch_operands = 0 : i64, tpu.core_type = #tpu.core_type<tc>, window_params = [{transform_indices = @transform_0, window_bounds = array<i64: 2, 4, 256>}, {pipeline_mode = #tpu.pipeline_mode<synchronous>, transform_indices = @transform_1, window_bounds = array<i64: 8, 4>}, {pipeline_mode = #tpu.pipeline_mode<synchronous>, transform_indices = @transform_2, window_bounds = array<i64: 8, 1>}, {pipeline_mode = #tpu.pipeline_mode<synchronous>, transform_indices = @transform_3, window_bounds = array<i64: 16, 8>}, {pipeline_mode = #tpu.pipeline_mode<synchronous>, transform_indices = @transform_4, window_bounds = array<i64: 16, 1>}, {transform_indices = @transform_5, window_bounds = array<i64: 2, 16, 256>}]} {
    %c0 = arith.constant 0 : index
    %c0_0 = arith.constant 0 : index
    %c0_1 = arith.constant 0 : index
    %0 = vector.load %arg2[%c0, %c0_0, %c0_1] : memref<2x4x256xf32, #tpu.memory_space<vmem>>, vector<2x4x256xf32>
    %c0_2 = arith.constant 0 : index
    %c0_3 = arith.constant 0 : index
    %1 = vector.load %arg3[%c0_2, %c0_3] : memref<8x4xf32, #tpu.memory_space<vmem>>, vector<8x4xf32>
    %c0_4 = arith.constant 0 : index
    %c0_5 = arith.constant 0 : index
    %2 = vector.load %arg4[%c0_4, %c0_5] : memref<8x1xf32, #tpu.memory_space<vmem>>, vector<8x1xf32>
    %3 = vector.extract_strided_slice %1 {offsets = [0, 0], sizes = [8, 1], strides = [1, 1]} : vector<8x4xf32> to vector<8x1xf32>
    %4 = vector.shape_cast %3 : vector<8x1xf32> to vector<1x8x1xf32>
    %5 = vector.extract_strided_slice %0 {offsets = [0, 0, 0], sizes = [2, 1, 256], strides = [1, 1, 1]} : vector<2x4x256xf32> to vector<2x1x256xf32>
    %6 = vector.broadcast %4 : vector<1x8x1xf32> to vector<2x8x256xf32>
    %7 = vector.broadcast %5 : vector<2x1x256xf32> to vector<2x8x256xf32>
    %8 = arith.mulf %6, %7 : vector<2x8x256xf32>
    %9 = vector.extract_strided_slice %1 {offsets = [0, 1], sizes = [8, 1], strides = [1, 1]} : vector<8x4xf32> to vector<8x1xf32>
    %10 = vector.shape_cast %9 : vector<8x1xf32> to vector<1x8x1xf32>
    %11 = vector.extract_strided_slice %0 {offsets = [0, 1, 0], sizes = [2, 1, 256], strides = [1, 1, 1]} : vector<2x4x256xf32> to vector<2x1x256xf32>
    %12 = vector.broadcast %10 : vector<1x8x1xf32> to vector<2x8x256xf32>
    %13 = vector.broadcast %11 : vector<2x1x256xf32> to vector<2x8x256xf32>
    %14 = arith.mulf %12, %13 : vector<2x8x256xf32>
    %15 = arith.addf %8, %14 : vector<2x8x256xf32>
    %16 = vector.extract_strided_slice %1 {offsets = [0, 2], sizes = [8, 1], strides = [1, 1]} : vector<8x4xf32> to vector<8x1xf32>
    %17 = vector.shape_cast %16 : vector<8x1xf32> to vector<1x8x1xf32>
    %18 = vector.extract_strided_slice %0 {offsets = [0, 2, 0], sizes = [2, 1, 256], strides = [1, 1, 1]} : vector<2x4x256xf32> to vector<2x1x256xf32>
    %19 = vector.broadcast %17 : vector<1x8x1xf32> to vector<2x8x256xf32>
    %20 = vector.broadcast %18 : vector<2x1x256xf32> to vector<2x8x256xf32>
    %21 = arith.mulf %19, %20 : vector<2x8x256xf32>
    %22 = arith.addf %15, %21 : vector<2x8x256xf32>
    %23 = vector.extract_strided_slice %1 {offsets = [0, 3], sizes = [8, 1], strides = [1, 1]} : vector<8x4xf32> to vector<8x1xf32>
    %24 = vector.shape_cast %23 : vector<8x1xf32> to vector<1x8x1xf32>
    %25 = vector.extract_strided_slice %0 {offsets = [0, 3, 0], sizes = [2, 1, 256], strides = [1, 1, 1]} : vector<2x4x256xf32> to vector<2x1x256xf32>
    %26 = vector.broadcast %24 : vector<1x8x1xf32> to vector<2x8x256xf32>
    %27 = vector.broadcast %25 : vector<2x1x256xf32> to vector<2x8x256xf32>
    %28 = arith.mulf %26, %27 : vector<2x8x256xf32>
    %29 = arith.addf %22, %28 : vector<2x8x256xf32>
    %30 = vector.shape_cast %2 : vector<8x1xf32> to vector<1x8x1xf32>
    %31 = vector.broadcast %30 : vector<1x8x1xf32> to vector<2x8x256xf32>
    %32 = arith.addf %29, %31 : vector<2x8x256xf32>
    %cst = arith.constant 0.000000e+00 : f32
    %33 = vector.broadcast %cst : f32 to vector<2x8x256xf32>
    %34 = arith.maximumf %32, %33 : vector<2x8x256xf32>
    %c0_6 = arith.constant 0 : index
    %c0_7 = arith.constant 0 : index
    %35 = vector.load %arg5[%c0_6, %c0_7] : memref<16x8xf32, #tpu.memory_space<vmem>>, vector<16x8xf32>
    %c0_8 = arith.constant 0 : index
    %c0_9 = arith.constant 0 : index
    %36 = vector.load %arg6[%c0_8, %c0_9] : memref<16x1xf32, #tpu.memory_space<vmem>>, vector<16x1xf32>
    %37 = vector.extract_strided_slice %35 {offsets = [0, 0], sizes = [16, 1], strides = [1, 1]} : vector<16x8xf32> to vector<16x1xf32>
    %38 = vector.shape_cast %37 : vector<16x1xf32> to vector<1x16x1xf32>
    %39 = vector.extract_strided_slice %34 {offsets = [0, 0, 0], sizes = [2, 1, 256], strides = [1, 1, 1]} : vector<2x8x256xf32> to vector<2x1x256xf32>
    %40 = vector.broadcast %38 : vector<1x16x1xf32> to vector<2x16x256xf32>
    %41 = vector.broadcast %39 : vector<2x1x256xf32> to vector<2x16x256xf32>
    %42 = arith.mulf %40, %41 : vector<2x16x256xf32>
    %43 = vector.extract_strided_slice %35 {offsets = [0, 1], sizes = [16, 1], strides = [1, 1]} : vector<16x8xf32> to vector<16x1xf32>
    %44 = vector.shape_cast %43 : vector<16x1xf32> to vector<1x16x1xf32>
    %45 = vector.extract_strided_slice %34 {offsets = [0, 1, 0], sizes = [2, 1, 256], strides = [1, 1, 1]} : vector<2x8x256xf32> to vector<2x1x256xf32>
    %46 = vector.broadcast %44 : vector<1x16x1xf32> to vector<2x16x256xf32>
    %47 = vector.broadcast %45 : vector<2x1x256xf32> to vector<2x16x256xf32>
    %48 = arith.mulf %46, %47 : vector<2x16x256xf32>
    %49 = arith.addf %42, %48 : vector<2x16x256xf32>
    %50 = vector.extract_strided_slice %35 {offsets = [0, 2], sizes = [16, 1], strides = [1, 1]} : vector<16x8xf32> to vector<16x1xf32>
    %51 = vector.shape_cast %50 : vector<16x1xf32> to vector<1x16x1xf32>
    %52 = vector.extract_strided_slice %34 {offsets = [0, 2, 0], sizes = [2, 1, 256], strides = [1, 1, 1]} : vector<2x8x256xf32> to vector<2x1x256xf32>
    %53 = vector.broadcast %51 : vector<1x16x1xf32> to vector<2x16x256xf32>
    %54 = vector.broadcast %52 : vector<2x1x256xf32> to vector<2x16x256xf32>
    %55 = arith.mulf %53, %54 : vector<2x16x256xf32>
    %56 = arith.addf %49, %55 : vector<2x16x256xf32>
    %57 = vector.extract_strided_slice %35 {offsets = [0, 3], sizes = [16, 1], strides = [1, 1]} : vector<16x8xf32> to vector<16x1xf32>
    %58 = vector.shape_cast %57 : vector<16x1xf32> to vector<1x16x1xf32>
    %59 = vector.extract_strided_slice %34 {offsets = [0, 3, 0], sizes = [2, 1, 256], strides = [1, 1, 1]} : vector<2x8x256xf32> to vector<2x1x256xf32>
    %60 = vector.broadcast %58 : vector<1x16x1xf32> to vector<2x16x256xf32>
    %61 = vector.broadcast %59 : vector<2x1x256xf32> to vector<2x16x256xf32>
    %62 = arith.mulf %60, %61 : vector<2x16x256xf32>
    %63 = arith.addf %56, %62 : vector<2x16x256xf32>
    %64 = vector.extract_strided_slice %35 {offsets = [0, 4], sizes = [16, 1], strides = [1, 1]} : vector<16x8xf32> to vector<16x1xf32>
    %65 = vector.shape_cast %64 : vector<16x1xf32> to vector<1x16x1xf32>
    %66 = vector.extract_strided_slice %34 {offsets = [0, 4, 0], sizes = [2, 1, 256], strides = [1, 1, 1]} : vector<2x8x256xf32> to vector<2x1x256xf32>
    %67 = vector.broadcast %65 : vector<1x16x1xf32> to vector<2x16x256xf32>
    %68 = vector.broadcast %66 : vector<2x1x256xf32> to vector<2x16x256xf32>
    %69 = arith.mulf %67, %68 : vector<2x16x256xf32>
    %70 = arith.addf %63, %69 : vector<2x16x256xf32>
    %71 = vector.extract_strided_slice %35 {offsets = [0, 5], sizes = [16, 1], strides = [1, 1]} : vector<16x8xf32> to vector<16x1xf32>
    %72 = vector.shape_cast %71 : vector<16x1xf32> to vector<1x16x1xf32>
    %73 = vector.extract_strided_slice %34 {offsets = [0, 5, 0], sizes = [2, 1, 256], strides = [1, 1, 1]} : vector<2x8x256xf32> to vector<2x1x256xf32>
    %74 = vector.broadcast %72 : vector<1x16x1xf32> to vector<2x16x256xf32>
    %75 = vector.broadcast %73 : vector<2x1x256xf32> to vector<2x16x256xf32>
    %76 = arith.mulf %74, %75 : vector<2x16x256xf32>
    %77 = arith.addf %70, %76 : vector<2x16x256xf32>
    %78 = vector.extract_strided_slice %35 {offsets = [0, 6], sizes = [16, 1], strides = [1, 1]} : vector<16x8xf32> to vector<16x1xf32>
    %79 = vector.shape_cast %78 : vector<16x1xf32> to vector<1x16x1xf32>
    %80 = vector.extract_strided_slice %34 {offsets = [0, 6, 0], sizes = [2, 1, 256], strides = [1, 1, 1]} : vector<2x8x256xf32> to vector<2x1x256xf32>
    %81 = vector.broadcast %79 : vector<1x16x1xf32> to vector<2x16x256xf32>
    %82 = vector.broadcast %80 : vector<2x1x256xf32> to vector<2x16x256xf32>
    %83 = arith.mulf %81, %82 : vector<2x16x256xf32>
    %84 = arith.addf %77, %83 : vector<2x16x256xf32>
    %85 = vector.extract_strided_slice %35 {offsets = [0, 7], sizes = [16, 1], strides = [1, 1]} : vector<16x8xf32> to vector<16x1xf32>
    %86 = vector.shape_cast %85 : vector<16x1xf32> to vector<1x16x1xf32>
    %87 = vector.extract_strided_slice %34 {offsets = [0, 7, 0], sizes = [2, 1, 256], strides = [1, 1, 1]} : vector<2x8x256xf32> to vector<2x1x256xf32>
    %88 = vector.broadcast %86 : vector<1x16x1xf32> to vector<2x16x256xf32>
    %89 = vector.broadcast %87 : vector<2x1x256xf32> to vector<2x16x256xf32>
    %90 = arith.mulf %88, %89 : vector<2x16x256xf32>
    %91 = arith.addf %84, %90 : vector<2x16x256xf32>
    %92 = vector.shape_cast %36 : vector<16x1xf32> to vector<1x16x1xf32>
    %93 = vector.broadcast %92 : vector<1x16x1xf32> to vector<2x16x256xf32>
    %94 = arith.addf %91, %93 : vector<2x16x256xf32>
    %cst_10 = arith.constant 0.000000e+00 : f32
    %95 = vector.broadcast %cst_10 : f32 to vector<2x16x256xf32>
    %96 = arith.maximumf %94, %95 : vector<2x16x256xf32>
    %c0_11 = arith.constant 0 : index
    %c0_12 = arith.constant 0 : index
    %c0_13 = arith.constant 0 : index
    %97 = vector.load %arg7[%c0_11, %c0_12, %c0_13] : memref<2x16x256xf32, #tpu.memory_space<vmem>>, vector<2x16x256xf32>
    tpu.vector_store %arg7[%c0_11, %c0_12, %c0_13], %96 {strides = array<i32>} : memref<2x16x256xf32, #tpu.memory_space<vmem>>, vector<2x16x256xf32>,
    return
  }
  func.func @transform_0(%arg0: i32, %arg1: i32) -> (i32, i32, i32) {
    %c0_i32 = arith.constant 0 : i32
    %c0_i32_0 = arith.constant 0 : i32
    return %arg0, %c0_i32, %arg1 : i32, i32, i32
  }
  func.func @transform_1(%arg0: i32, %arg1: i32) -> (i32, i32) {
    %c0_i32 = arith.constant 0 : i32
    %c0_i32_0 = arith.constant 0 : i32
    %c0_i32_1 = arith.constant 0 : i32
    return %c0_i32, %c0_i32_0 : i32, i32
  }
  func.func @transform_2(%arg0: i32, %arg1: i32) -> (i32, i32) {
    %c0_i32 = arith.constant 0 : i32
    %c0_i32_0 = arith.constant 0 : i32
    %c0_i32_1 = arith.constant 0 : i32
    return %c0_i32, %c0_i32_0 : i32, i32
  }
  func.func @transform_3(%arg0: i32, %arg1: i32) -> (i32, i32) {
    %c0_i32 = arith.constant 0 : i32
    %c0_i32_0 = arith.constant 0 : i32
    %c0_i32_1 = arith.constant 0 : i32
    return %c0_i32, %c0_i32_0 : i32, i32
  }
  func.func @transform_4(%arg0: i32, %arg1: i32) -> (i32, i32) {
    %c0_i32 = arith.constant 0 : i32
    %c0_i32_0 = arith.constant 0 : i32
    %c0_i32_1 = arith.constant 0 : i32
    return %c0_i32, %c0_i32_0 : i32, i32
  }
  func.func @transform_5(%arg0: i32, %arg1: i32) -> (i32, i32, i32) {
    %c0_i32 = arith.constant 0 : i32
    %c0_i32_0 = arith.constant 0 : i32
    return %arg0, %c0_i32, %arg1 : i32, i32, i32
  }
}

module attributes {stable_mosaic.version = 11 : i64} {
  func.func @kernel(%arg0: i32, %arg1: i32, %arg2: i32, %arg3: memref<2x4x256xf32, #tpu.memory_space<vmem>>, %arg4: memref<8x4xf32, #tpu.memory_space<vmem>>, %arg5: memref<8x1xf32, #tpu.memory_space<vmem>>, %arg6: memref<8x1xf32, #tpu.memory_space<vmem>>, %arg7: memref<8x1xf32, #tpu.memory_space<vmem>>, %arg8: memref<16x8xf32, #tpu.memory_space<vmem>>, %arg9: memref<16x1xf32, #tpu.memory_space<vmem>>, %arg10: memref<16x1xf32, #tpu.memory_space<vmem>>, %arg11: memref<16x1xf32, #tpu.memory_space<vmem>>, %arg12: memref<8x4xf32, #tpu.memory_space<vmem>>, %arg13: memref<8x1xf32, #tpu.memory_space<vmem>>, %arg14: memref<16x8xf32, #tpu.memory_space<vmem>>, %arg15: memref<16x1xf32, #tpu.memory_space<vmem>>, %arg16: memref<8x1xf32, #tpu.memory_space<vmem>>, %arg17: memref<8x1xf32, #tpu.memory_space<vmem>>, %arg18: memref<16x1xf32, #tpu.memory_space<vmem>>, %arg19: memref<16x1xf32, #tpu.memory_space<vmem>>) attributes {dimension_semantics = [#tpu.dimension_semantics<arbitrary>, #tpu.dimension_semantics<arbitrary>, #tpu.dimension_semantics<arbitrary>], iteration_bounds = array<i64: 2, 1, 1>, scalar_prefetch = 0 : i64, scratch_operands = 4 : i64, tpu.core_type = #tpu.core_type<tc>, window_params = [{transform_indices = @transform_0, window_bounds = array<i64: 2, 4, 256>}, {pipeline_mode = #tpu.pipeline_mode<synchronous>, transform_indices = @transform_1, window_bounds = array<i64: 8, 4>}, {pipeline_mode = #tpu.pipeline_mode<synchronous>, transform_indices = @transform_2, window_bounds = array<i64: 8, 1>}, {pipeline_mode = #tpu.pipeline_mode<synchronous>, transform_indices = @transform_3, window_bounds = array<i64: 8, 1>}, {pipeline_mode = #tpu.pipeline_mode<synchronous>, transform_indices = @transform_4, window_bounds = array<i64: 8, 1>}, {pipeline_mode = #tpu.pipeline_mode<synchronous>, transform_indices = @transform_5, window_bounds = array<i64: 16, 8>}, {pipeline_mode = #tpu.pipeline_mode<synchronous>, transform_indices = @transform_6, window_bounds = array<i64: 16, 1>}, {pipeline_mode = #tpu.pipeline_mode<synchronous>, transform_indices = @transform_7, window_bounds = array<i64: 16, 1>}, {pipeline_mode = #tpu.pipeline_mode<synchronous>, transform_indices = @transform_8, window_bounds = array<i64: 16, 1>}, {pipeline_mode = #tpu.pipeline_mode<synchronous>, transform_indices = @transform_9, window_bounds = array<i64: 8, 4>}, {pipeline_mode = #tpu.pipeline_mode<synchronous>, transform_indices = @transform_10, window_bounds = array<i64: 8, 1>}, {pipeline_mode = #tpu.pipeline_mode<synchronous>, transform_indices = @transform_11, window_bounds = array<i64: 16, 8>}, {pipeline_mode = #tpu.pipeline_mode<synchronous>, transform_indices = @transform_12, window_bounds = array<i64: 16, 1>}]} {
    %c0_i32 = arith.constant 0 : i32
    %0 = arith.cmpi eq, %arg1, %c0_i32 : i32
    %c0_i32_0 = arith.constant 0 : i32
    %1 = arith.cmpi eq, %arg2, %c0_i32_0 : i32
    %2 = arith.andi %0, %1 : i1
    %c0_i32_1 = arith.constant 0 : i32
    %3 = arith.cmpi eq, %arg0, %c0_i32_1 : i32
    %4 = arith.andi %3, %2 : i1
    %5 = arith.extui %4 : i1 to i32
    %c0_i32_2 = arith.constant 0 : i32
    %6 = arith.cmpi ne, %5, %c0_i32_2 : i32
    scf.if %6 {
      %cst = arith.constant 0.000000e+00 : f32
      %25 = vector.broadcast %cst : f32 to vector<8x1xf32>
      %c0_14 = arith.constant 0 : index
      %c0_15 = arith.constant 0 : index
      %26 = vector.load %arg16[%c0_14, %c0_15] : memref<8x1xf32, #tpu.memory_space<vmem>>, vector<8x1xf32>
      tpu.vector_store %arg16[%c0_14, %c0_15], %25 {strides = array<i32>} : memref<8x1xf32, #tpu.memory_space<vmem>>, vector<8x1xf32>,
      %cst_16 = arith.constant 0.000000e+00 : f32
      %27 = vector.broadcast %cst_16 : f32 to vector<8x1xf32>
      %c0_17 = arith.constant 0 : index
      %c0_18 = arith.constant 0 : index
      %28 = vector.load %arg17[%c0_17, %c0_18] : memref<8x1xf32, #tpu.memory_space<vmem>>, vector<8x1xf32>
      tpu.vector_store %arg17[%c0_17, %c0_18], %27 {strides = array<i32>} : memref<8x1xf32, #tpu.memory_space<vmem>>, vector<8x1xf32>,
      %cst_19 = arith.constant 0.000000e+00 : f32
      %29 = vector.broadcast %cst_19 : f32 to vector<16x1xf32>
      %c0_20 = arith.constant 0 : index
      %c0_21 = arith.constant 0 : index
      %30 = vector.load %arg18[%c0_20, %c0_21] : memref<16x1xf32, #tpu.memory_space<vmem>>, vector<16x1xf32>
      tpu.vector_store %arg18[%c0_20, %c0_21], %29 {strides = array<i32>} : memref<16x1xf32, #tpu.memory_space<vmem>>, vector<16x1xf32>,
      %cst_22 = arith.constant 0.000000e+00 : f32
      %31 = vector.broadcast %cst_22 : f32 to vector<16x1xf32>
      %c0_23 = arith.constant 0 : index
      %c0_24 = arith.constant 0 : index
      %32 = vector.load %arg19[%c0_23, %c0_24] : memref<16x1xf32, #tpu.memory_space<vmem>>, vector<16x1xf32>
      tpu.vector_store %arg19[%c0_23, %c0_24], %31 {strides = array<i32>} : memref<16x1xf32, #tpu.memory_space<vmem>>, vector<16x1xf32>,
    } else {
    }
    %c1_i32 = arith.constant 1 : i32
    %7 = arith.cmpi eq, %arg0, %c1_i32 : i32
    %8 = arith.andi %7, %2 : i1
    %9 = arith.extui %8 : i1 to i32
    %c0_i32_3 = arith.constant 0 : i32
    %10 = arith.cmpi ne, %9, %c0_i32_3 : i32
    scf.if %10 {
      %c0_14 = arith.constant 0 : index
      %c0_15 = arith.constant 0 : index
      %25 = vector.load %arg16[%c0_14, %c0_15] : memref<8x1xf32, #tpu.memory_space<vmem>>, vector<8x1xf32>
      %cst = arith.constant 0.001953125 : f32
      %26 = vector.broadcast %cst : f32 to vector<8x1xf32>
      %27 = arith.mulf %25, %26 : vector<8x1xf32>
      %c0_16 = arith.constant 0 : index
      %c0_17 = arith.constant 0 : index
      %28 = vector.load %arg17[%c0_16, %c0_17] : memref<8x1xf32, #tpu.memory_space<vmem>>, vector<8x1xf32>
      %cst_18 = arith.constant 0.001953125 : f32
      %29 = vector.broadcast %cst_18 : f32 to vector<8x1xf32>
      %30 = arith.mulf %28, %29 : vector<8x1xf32>
      %31 = arith.mulf %27, %27 : vector<8x1xf32>
      %32 = arith.subf %30, %31 : vector<8x1xf32>
      %c0_19 = arith.constant 0 : index
      %c0_20 = arith.constant 0 : index
      %33 = vector.load %arg6[%c0_19, %c0_20] : memref<8x1xf32, #tpu.memory_space<vmem>>, vector<8x1xf32>
      %cst_21 = arith.constant 0.000000e+00 : f32
      %34 = vector.broadcast %cst_21 : f32 to vector<8x1xf32>
      %35 = arith.maximumf %32, %34 : vector<8x1xf32>
      %cst_22 = arith.constant 9.99999974E-6 : f32
      %36 = vector.broadcast %cst_22 : f32 to vector<8x1xf32>
      %37 = arith.addf %35, %36 : vector<8x1xf32>
      %38 = math.rsqrt %37 : vector<8x1xf32>
      %39 = arith.mulf %33, %38 : vector<8x1xf32>
      %c0_23 = arith.constant 0 : index
      %c0_24 = arith.constant 0 : index
      %40 = vector.load %arg4[%c0_23, %c0_24] : memref<8x4xf32, #tpu.memory_space<vmem>>, vector<8x4xf32>
      %41 = vector.broadcast %39 : vector<8x1xf32> to vector<8x4xf32>
      %42 = arith.mulf %41, %40 : vector<8x4xf32>
      %c0_25 = arith.constant 0 : index
      %c0_26 = arith.constant 0 : index
      %43 = vector.load %arg12[%c0_25, %c0_26] : memref<8x4xf32, #tpu.memory_space<vmem>>, vector<8x4xf32>
      tpu.vector_store %arg12[%c0_25, %c0_26], %42 {strides = array<i32>} : memref<8x4xf32, #tpu.memory_space<vmem>>, vector<8x4xf32>,
      %c0_27 = arith.constant 0 : index
      %c0_28 = arith.constant 0 : index
      %44 = vector.load %arg5[%c0_27, %c0_28] : memref<8x1xf32, #tpu.memory_space<vmem>>, vector<8x1xf32>
      %45 = arith.subf %44, %27 : vector<8x1xf32>
      %46 = arith.mulf %39, %45 : vector<8x1xf32>
      %c0_29 = arith.constant 0 : index
      %c0_30 = arith.constant 0 : index
      %47 = vector.load %arg7[%c0_29, %c0_30] : memref<8x1xf32, #tpu.memory_space<vmem>>, vector<8x1xf32>
      %48 = arith.addf %46, %47 : vector<8x1xf32>
      %c0_31 = arith.constant 0 : index
      %c0_32 = arith.constant 0 : index
      %49 = vector.load %arg13[%c0_31, %c0_32] : memref<8x1xf32, #tpu.memory_space<vmem>>, vector<8x1xf32>
      tpu.vector_store %arg13[%c0_31, %c0_32], %48 {strides = array<i32>} : memref<8x1xf32, #tpu.memory_space<vmem>>, vector<8x1xf32>,
    } else {
    }
    %c0 = arith.constant 0 : index
    %c0_4 = arith.constant 0 : index
    %c0_5 = arith.constant 0 : index
    %11 = vector.load %arg3[%c0, %c0_4, %c0_5] : memref<2x4x256xf32, #tpu.memory_space<vmem>>, vector<2x4x256xf32>
    %c0_i32_6 = arith.constant 0 : i32
    %12 = arith.cmpi eq, %arg0, %c0_i32_6 : i32
    %13 = arith.extui %12 : i1 to i32
    %c0_i32_7 = arith.constant 0 : i32
    %14 = arith.cmpi ne, %13, %c0_i32_7 : i32
    scf.if %14 {
      %c0_14 = arith.constant 0 : index
      %c0_15 = arith.constant 0 : index
      %25 = vector.load %arg4[%c0_14, %c0_15] : memref<8x4xf32, #tpu.memory_space<vmem>>, vector<8x4xf32>
      %c0_16 = arith.constant 0 : index
      %c0_17 = arith.constant 0 : index
      %26 = vector.load %arg5[%c0_16, %c0_17] : memref<8x1xf32, #tpu.memory_space<vmem>>, vector<8x1xf32>
      %27 = vector.extract_strided_slice %25 {offsets = [0, 0], sizes = [8, 1], strides = [1, 1]} : vector<8x4xf32> to vector<8x1xf32>
      %28 = vector.shape_cast %27 : vector<8x1xf32> to vector<1x8x1xf32>
      %29 = vector.extract_strided_slice %11 {offsets = [0, 0, 0], sizes = [2, 1, 256], strides = [1, 1, 1]} : vector<2x4x256xf32> to vector<2x1x256xf32>
      %30 = vector.broadcast %28 : vector<1x8x1xf32> to vector<2x8x256xf32>
      %31 = vector.broadcast %29 : vector<2x1x256xf32> to vector<2x8x256xf32>
      %32 = arith.mulf %30, %31 : vector<2x8x256xf32>
      %33 = vector.extract_strided_slice %25 {offsets = [0, 1], sizes = [8, 1], strides = [1, 1]} : vector<8x4xf32> to vector<8x1xf32>
      %34 = vector.shape_cast %33 : vector<8x1xf32> to vector<1x8x1xf32>
      %35 = vector.extract_strided_slice %11 {offsets = [0, 1, 0], sizes = [2, 1, 256], strides = [1, 1, 1]} : vector<2x4x256xf32> to vector<2x1x256xf32>
      %36 = vector.broadcast %34 : vector<1x8x1xf32> to vector<2x8x256xf32>
      %37 = vector.broadcast %35 : vector<2x1x256xf32> to vector<2x8x256xf32>
      %38 = arith.mulf %36, %37 : vector<2x8x256xf32>
      %39 = arith.addf %32, %38 : vector<2x8x256xf32>
      %40 = vector.extract_strided_slice %25 {offsets = [0, 2], sizes = [8, 1], strides = [1, 1]} : vector<8x4xf32> to vector<8x1xf32>
      %41 = vector.shape_cast %40 : vector<8x1xf32> to vector<1x8x1xf32>
      %42 = vector.extract_strided_slice %11 {offsets = [0, 2, 0], sizes = [2, 1, 256], strides = [1, 1, 1]} : vector<2x4x256xf32> to vector<2x1x256xf32>
      %43 = vector.broadcast %41 : vector<1x8x1xf32> to vector<2x8x256xf32>
      %44 = vector.broadcast %42 : vector<2x1x256xf32> to vector<2x8x256xf32>
      %45 = arith.mulf %43, %44 : vector<2x8x256xf32>
      %46 = arith.addf %39, %45 : vector<2x8x256xf32>
      %47 = vector.extract_strided_slice %25 {offsets = [0, 3], sizes = [8, 1], strides = [1, 1]} : vector<8x4xf32> to vector<8x1xf32>
      %48 = vector.shape_cast %47 : vector<8x1xf32> to vector<1x8x1xf32>
      %49 = vector.extract_strided_slice %11 {offsets = [0, 3, 0], sizes = [2, 1, 256], strides = [1, 1, 1]} : vector<2x4x256xf32> to vector<2x1x256xf32>
      %50 = vector.broadcast %48 : vector<1x8x1xf32> to vector<2x8x256xf32>
      %51 = vector.broadcast %49 : vector<2x1x256xf32> to vector<2x8x256xf32>
      %52 = arith.mulf %50, %51 : vector<2x8x256xf32>
      %53 = arith.addf %46, %52 : vector<2x8x256xf32>
      %54 = vector.shape_cast %26 : vector<8x1xf32> to vector<1x8x1xf32>
      %55 = vector.broadcast %54 : vector<1x8x1xf32> to vector<2x8x256xf32>
      %56 = arith.addf %53, %55 : vector<2x8x256xf32>
      %57 = arith.mulf %56, %56 : vector<2x8x256xf32>
      %c0_18 = arith.constant 0 : index
      %c0_19 = arith.constant 0 : index
      %58 = vector.load %arg16[%c0_18, %c0_19] : memref<8x1xf32, #tpu.memory_space<vmem>>, vector<8x1xf32>
      %cst = arith.constant dense<0.000000e+00> : vector<8x256xf32>
      %59 = vector.multi_reduction <add>, %56, %cst [0] : vector<2x8x256xf32> to vector<8x256xf32>
      %cst_20 = arith.constant dense<0.000000e+00> : vector<8xf32>
      %60 = vector.multi_reduction <add>, %59, %cst_20 [1] : vector<8x256xf32> to vector<8xf32>
      %61 = vector.shape_cast %60 : vector<8xf32> to vector<8x1xf32>
      %62 = arith.addf %58, %61 : vector<8x1xf32>
      %c0_21 = arith.constant 0 : index
      %c0_22 = arith.constant 0 : index
      %63 = vector.load %arg16[%c0_21, %c0_22] : memref<8x1xf32, #tpu.memory_space<vmem>>, vector<8x1xf32>
      tpu.vector_store %arg16[%c0_21, %c0_22], %62 {strides = array<i32>} : memref<8x1xf32, #tpu.memory_space<vmem>>, vector<8x1xf32>,
      %c0_23 = arith.constant 0 : index
      %c0_24 = arith.constant 0 : index
      %64 = vector.load %arg17[%c0_23, %c0_24] : memref<8x1xf32, #tpu.memory_space<vmem>>, vector<8x1xf32>
      %cst_25 = arith.constant dense<0.000000e+00> : vector<8x256xf32>
      %65 = vector.multi_reduction <add>, %57, %cst_25 [0] : vector<2x8x256xf32> to vector<8x256xf32>
      %cst_26 = arith.constant dense<0.000000e+00> : vector<8xf32>
      %66 = vector.multi_reduction <add>, %65, %cst_26 [1] : vector<8x256xf32> to vector<8xf32>
      %67 = vector.shape_cast %66 : vector<8xf32> to vector<8x1xf32>
      %68 = arith.addf %64, %67 : vector<8x1xf32>
      %c0_27 = arith.constant 0 : index
      %c0_28 = arith.constant 0 : index
      %69 = vector.load %arg17[%c0_27, %c0_28] : memref<8x1xf32, #tpu.memory_space<vmem>>, vector<8x1xf32>
      tpu.vector_store %arg17[%c0_27, %c0_28], %68 {strides = array<i32>} : memref<8x1xf32, #tpu.memory_space<vmem>>, vector<8x1xf32>,
    } else {
    }
    %c1_i32_8 = arith.constant 1 : i32
    %15 = arith.cmpi eq, %arg0, %c1_i32_8 : i32
    %16 = arith.extui %15 : i1 to i32
    %c0_i32_9 = arith.constant 0 : i32
    %17 = arith.cmpi ne, %16, %c0_i32_9 : i32
    scf.if %17 {
      %c0_14 = arith.constant 0 : index
      %c0_15 = arith.constant 0 : index
      %25 = vector.load %arg12[%c0_14, %c0_15] : memref<8x4xf32, #tpu.memory_space<vmem>>, vector<8x4xf32>
      %c0_16 = arith.constant 0 : index
      %c0_17 = arith.constant 0 : index
      %26 = vector.load %arg13[%c0_16, %c0_17] : memref<8x1xf32, #tpu.memory_space<vmem>>, vector<8x1xf32>
      %27 = vector.extract_strided_slice %25 {offsets = [0, 0], sizes = [8, 1], strides = [1, 1]} : vector<8x4xf32> to vector<8x1xf32>
      %28 = vector.shape_cast %27 : vector<8x1xf32> to vector<1x8x1xf32>
      %29 = vector.extract_strided_slice %11 {offsets = [0, 0, 0], sizes = [2, 1, 256], strides = [1, 1, 1]} : vector<2x4x256xf32> to vector<2x1x256xf32>
      %30 = vector.broadcast %28 : vector<1x8x1xf32> to vector<2x8x256xf32>
      %31 = vector.broadcast %29 : vector<2x1x256xf32> to vector<2x8x256xf32>
      %32 = arith.mulf %30, %31 : vector<2x8x256xf32>
      %33 = vector.extract_strided_slice %25 {offsets = [0, 1], sizes = [8, 1], strides = [1, 1]} : vector<8x4xf32> to vector<8x1xf32>
      %34 = vector.shape_cast %33 : vector<8x1xf32> to vector<1x8x1xf32>
      %35 = vector.extract_strided_slice %11 {offsets = [0, 1, 0], sizes = [2, 1, 256], strides = [1, 1, 1]} : vector<2x4x256xf32> to vector<2x1x256xf32>
      %36 = vector.broadcast %34 : vector<1x8x1xf32> to vector<2x8x256xf32>
      %37 = vector.broadcast %35 : vector<2x1x256xf32> to vector<2x8x256xf32>
      %38 = arith.mulf %36, %37 : vector<2x8x256xf32>
      %39 = arith.addf %32, %38 : vector<2x8x256xf32>
      %40 = vector.extract_strided_slice %25 {offsets = [0, 2], sizes = [8, 1], strides = [1, 1]} : vector<8x4xf32> to vector<8x1xf32>
      %41 = vector.shape_cast %40 : vector<8x1xf32> to vector<1x8x1xf32>
      %42 = vector.extract_strided_slice %11 {offsets = [0, 2, 0], sizes = [2, 1, 256], strides = [1, 1, 1]} : vector<2x4x256xf32> to vector<2x1x256xf32>
      %43 = vector.broadcast %41 : vector<1x8x1xf32> to vector<2x8x256xf32>
      %44 = vector.broadcast %42 : vector<2x1x256xf32> to vector<2x8x256xf32>
      %45 = arith.mulf %43, %44 : vector<2x8x256xf32>
      %46 = arith.addf %39, %45 : vector<2x8x256xf32>
      %47 = vector.extract_strided_slice %25 {offsets = [0, 3], sizes = [8, 1], strides = [1, 1]} : vector<8x4xf32> to vector<8x1xf32>
      %48 = vector.shape_cast %47 : vector<8x1xf32> to vector<1x8x1xf32>
      %49 = vector.extract_strided_slice %11 {offsets = [0, 3, 0], sizes = [2, 1, 256], strides = [1, 1, 1]} : vector<2x4x256xf32> to vector<2x1x256xf32>
      %50 = vector.broadcast %48 : vector<1x8x1xf32> to vector<2x8x256xf32>
      %51 = vector.broadcast %49 : vector<2x1x256xf32> to vector<2x8x256xf32>
      %52 = arith.mulf %50, %51 : vector<2x8x256xf32>
      %53 = arith.addf %46, %52 : vector<2x8x256xf32>
      %54 = vector.shape_cast %26 : vector<8x1xf32> to vector<1x8x1xf32>
      %55 = vector.broadcast %54 : vector<1x8x1xf32> to vector<2x8x256xf32>
      %56 = arith.addf %53, %55 : vector<2x8x256xf32>
      %cst = arith.constant 0.000000e+00 : f32
      %57 = vector.broadcast %cst : f32 to vector<2x8x256xf32>
      %58 = arith.maximumf %56, %57 : vector<2x8x256xf32>
      %c0_18 = arith.constant 0 : index
      %c0_19 = arith.constant 0 : index
      %59 = vector.load %arg8[%c0_18, %c0_19] : memref<16x8xf32, #tpu.memory_space<vmem>>, vector<16x8xf32>
      %c0_20 = arith.constant 0 : index
      %c0_21 = arith.constant 0 : index
      %60 = vector.load %arg9[%c0_20, %c0_21] : memref<16x1xf32, #tpu.memory_space<vmem>>, vector<16x1xf32>
      %61 = vector.extract_strided_slice %59 {offsets = [0, 0], sizes = [16, 1], strides = [1, 1]} : vector<16x8xf32> to vector<16x1xf32>
      %62 = vector.shape_cast %61 : vector<16x1xf32> to vector<1x16x1xf32>
      %63 = vector.extract_strided_slice %58 {offsets = [0, 0, 0], sizes = [2, 1, 256], strides = [1, 1, 1]} : vector<2x8x256xf32> to vector<2x1x256xf32>
      %64 = vector.broadcast %62 : vector<1x16x1xf32> to vector<2x16x256xf32>
      %65 = vector.broadcast %63 : vector<2x1x256xf32> to vector<2x16x256xf32>
      %66 = arith.mulf %64, %65 : vector<2x16x256xf32>
      %67 = vector.extract_strided_slice %59 {offsets = [0, 1], sizes = [16, 1], strides = [1, 1]} : vector<16x8xf32> to vector<16x1xf32>
      %68 = vector.shape_cast %67 : vector<16x1xf32> to vector<1x16x1xf32>
      %69 = vector.extract_strided_slice %58 {offsets = [0, 1, 0], sizes = [2, 1, 256], strides = [1, 1, 1]} : vector<2x8x256xf32> to vector<2x1x256xf32>
      %70 = vector.broadcast %68 : vector<1x16x1xf32> to vector<2x16x256xf32>
      %71 = vector.broadcast %69 : vector<2x1x256xf32> to vector<2x16x256xf32>
      %72 = arith.mulf %70, %71 : vector<2x16x256xf32>
      %73 = arith.addf %66, %72 : vector<2x16x256xf32>
      %74 = vector.extract_strided_slice %59 {offsets = [0, 2], sizes = [16, 1], strides = [1, 1]} : vector<16x8xf32> to vector<16x1xf32>
      %75 = vector.shape_cast %74 : vector<16x1xf32> to vector<1x16x1xf32>
      %76 = vector.extract_strided_slice %58 {offsets = [0, 2, 0], sizes = [2, 1, 256], strides = [1, 1, 1]} : vector<2x8x256xf32> to vector<2x1x256xf32>
      %77 = vector.broadcast %75 : vector<1x16x1xf32> to vector<2x16x256xf32>
      %78 = vector.broadcast %76 : vector<2x1x256xf32> to vector<2x16x256xf32>
      %79 = arith.mulf %77, %78 : vector<2x16x256xf32>
      %80 = arith.addf %73, %79 : vector<2x16x256xf32>
      %81 = vector.extract_strided_slice %59 {offsets = [0, 3], sizes = [16, 1], strides = [1, 1]} : vector<16x8xf32> to vector<16x1xf32>
      %82 = vector.shape_cast %81 : vector<16x1xf32> to vector<1x16x1xf32>
      %83 = vector.extract_strided_slice %58 {offsets = [0, 3, 0], sizes = [2, 1, 256], strides = [1, 1, 1]} : vector<2x8x256xf32> to vector<2x1x256xf32>
      %84 = vector.broadcast %82 : vector<1x16x1xf32> to vector<2x16x256xf32>
      %85 = vector.broadcast %83 : vector<2x1x256xf32> to vector<2x16x256xf32>
      %86 = arith.mulf %84, %85 : vector<2x16x256xf32>
      %87 = arith.addf %80, %86 : vector<2x16x256xf32>
      %88 = vector.extract_strided_slice %59 {offsets = [0, 4], sizes = [16, 1], strides = [1, 1]} : vector<16x8xf32> to vector<16x1xf32>
      %89 = vector.shape_cast %88 : vector<16x1xf32> to vector<1x16x1xf32>
      %90 = vector.extract_strided_slice %58 {offsets = [0, 4, 0], sizes = [2, 1, 256], strides = [1, 1, 1]} : vector<2x8x256xf32> to vector<2x1x256xf32>
      %91 = vector.broadcast %89 : vector<1x16x1xf32> to vector<2x16x256xf32>
      %92 = vector.broadcast %90 : vector<2x1x256xf32> to vector<2x16x256xf32>
      %93 = arith.mulf %91, %92 : vector<2x16x256xf32>
      %94 = arith.addf %87, %93 : vector<2x16x256xf32>
      %95 = vector.extract_strided_slice %59 {offsets = [0, 5], sizes = [16, 1], strides = [1, 1]} : vector<16x8xf32> to vector<16x1xf32>
      %96 = vector.shape_cast %95 : vector<16x1xf32> to vector<1x16x1xf32>
      %97 = vector.extract_strided_slice %58 {offsets = [0, 5, 0], sizes = [2, 1, 256], strides = [1, 1, 1]} : vector<2x8x256xf32> to vector<2x1x256xf32>
      %98 = vector.broadcast %96 : vector<1x16x1xf32> to vector<2x16x256xf32>
      %99 = vector.broadcast %97 : vector<2x1x256xf32> to vector<2x16x256xf32>
      %100 = arith.mulf %98, %99 : vector<2x16x256xf32>
      %101 = arith.addf %94, %100 : vector<2x16x256xf32>
      %102 = vector.extract_strided_slice %59 {offsets = [0, 6], sizes = [16, 1], strides = [1, 1]} : vector<16x8xf32> to vector<16x1xf32>
      %103 = vector.shape_cast %102 : vector<16x1xf32> to vector<1x16x1xf32>
      %104 = vector.extract_strided_slice %58 {offsets = [0, 6, 0], sizes = [2, 1, 256], strides = [1, 1, 1]} : vector<2x8x256xf32> to vector<2x1x256xf32>
      %105 = vector.broadcast %103 : vector<1x16x1xf32> to vector<2x16x256xf32>
      %106 = vector.broadcast %104 : vector<2x1x256xf32> to vector<2x16x256xf32>
      %107 = arith.mulf %105, %106 : vector<2x16x256xf32>
      %108 = arith.addf %101, %107 : vector<2x16x256xf32>
      %109 = vector.extract_strided_slice %59 {offsets = [0, 7], sizes = [16, 1], strides = [1, 1]} : vector<16x8xf32> to vector<16x1xf32>
      %110 = vector.shape_cast %109 : vector<16x1xf32> to vector<1x16x1xf32>
      %111 = vector.extract_strided_slice %58 {offsets = [0, 7, 0], sizes = [2, 1, 256], strides = [1, 1, 1]} : vector<2x8x256xf32> to vector<2x1x256xf32>
      %112 = vector.broadcast %110 : vector<1x16x1xf32> to vector<2x16x256xf32>
      %113 = vector.broadcast %111 : vector<2x1x256xf32> to vector<2x16x256xf32>
      %114 = arith.mulf %112, %113 : vector<2x16x256xf32>
      %115 = arith.addf %108, %114 : vector<2x16x256xf32>
      %116 = vector.shape_cast %60 : vector<16x1xf32> to vector<1x16x1xf32>
      %117 = vector.broadcast %116 : vector<1x16x1xf32> to vector<2x16x256xf32>
      %118 = arith.addf %115, %117 : vector<2x16x256xf32>
      %119 = arith.mulf %118, %118 : vector<2x16x256xf32>
      %c0_22 = arith.constant 0 : index
      %c0_23 = arith.constant 0 : index
      %120 = vector.load %arg18[%c0_22, %c0_23] : memref<16x1xf32, #tpu.memory_space<vmem>>, vector<16x1xf32>
      %cst_24 = arith.constant dense<0.000000e+00> : vector<16x256xf32>
      %121 = vector.multi_reduction <add>, %118, %cst_24 [0] : vector<2x16x256xf32> to vector<16x256xf32>
      %cst_25 = arith.constant dense<0.000000e+00> : vector<16xf32>
      %122 = vector.multi_reduction <add>, %121, %cst_25 [1] : vector<16x256xf32> to vector<16xf32>
      %123 = vector.shape_cast %122 : vector<16xf32> to vector<16x1xf32>
      %124 = arith.addf %120, %123 : vector<16x1xf32>
      %c0_26 = arith.constant 0 : index
      %c0_27 = arith.constant 0 : index
      %125 = vector.load %arg18[%c0_26, %c0_27] : memref<16x1xf32, #tpu.memory_space<vmem>>, vector<16x1xf32>
      tpu.vector_store %arg18[%c0_26, %c0_27], %124 {strides = array<i32>} : memref<16x1xf32, #tpu.memory_space<vmem>>, vector<16x1xf32>,
      %c0_28 = arith.constant 0 : index
      %c0_29 = arith.constant 0 : index
      %126 = vector.load %arg19[%c0_28, %c0_29] : memref<16x1xf32, #tpu.memory_space<vmem>>, vector<16x1xf32>
      %cst_30 = arith.constant dense<0.000000e+00> : vector<16x256xf32>
      %127 = vector.multi_reduction <add>, %119, %cst_30 [0] : vector<2x16x256xf32> to vector<16x256xf32>
      %cst_31 = arith.constant dense<0.000000e+00> : vector<16xf32>
      %128 = vector.multi_reduction <add>, %127, %cst_31 [1] : vector<16x256xf32> to vector<16xf32>
      %129 = vector.shape_cast %128 : vector<16xf32> to vector<16x1xf32>
      %130 = arith.addf %126, %129 : vector<16x1xf32>
      %c0_32 = arith.constant 0 : index
      %c0_33 = arith.constant 0 : index
      %131 = vector.load %arg19[%c0_32, %c0_33] : memref<16x1xf32, #tpu.memory_space<vmem>>, vector<16x1xf32>
      tpu.vector_store %arg19[%c0_32, %c0_33], %130 {strides = array<i32>} : memref<16x1xf32, #tpu.memory_space<vmem>>, vector<16x1xf32>,
    } else {
    }
    %c1_i32_10 = arith.constant 1 : i32
    %18 = arith.cmpi eq, %arg0, %c1_i32_10 : i32
    %c0_i32_11 = arith.constant 0 : i32
    %19 = arith.cmpi eq, %arg1, %c0_i32_11 : i32
    %20 = arith.andi %18, %19 : i1
    %c0_i32_12 = arith.constant 0 : i32
    %21 = arith.cmpi eq, %arg2, %c0_i32_12 : i32
    %22 = arith.andi %20, %21 : i1
    %23 = arith.extui %22 : i1 to i32
    %c0_i32_13 = arith.constant 0 : i32
    %24 = arith.cmpi ne, %23, %c0_i32_13 : i32
    scf.if %24 {
      %c0_14 = arith.constant 0 : index
      %c0_15 = arith.constant 0 : index
      %25 = vector.load %arg18[%c0_14, %c0_15] : memref<16x1xf32, #tpu.memory_space<vmem>>, vector<16x1xf32>
      %cst = arith.constant 0.001953125 : f32
      %26 = vector.broadcast %cst : f32 to vector<16x1xf32>
      %27 = arith.mulf %25, %26 : vector<16x1xf32>
      %c0_16 = arith.constant 0 : index
      %c0_17 = arith.constant 0 : index
      %28 = vector.load %arg19[%c0_16, %c0_17] : memref<16x1xf32, #tpu.memory_space<vmem>>, vector<16x1xf32>
      %cst_18 = arith.constant 0.001953125 : f32
      %29 = vector.broadcast %cst_18 : f32 to vector<16x1xf32>
      %30 = arith.mulf %28, %29 : vector<16x1xf32>
      %31 = arith.mulf %27, %27 : vector<16x1xf32>
      %32 = arith.subf %30, %31 : vector<16x1xf32>
      %c0_19 = arith.constant 0 : index
      %c0_20 = arith.constant 0 : index
      %33 = vector.load %arg10[%c0_19, %c0_20] : memref<16x1xf32, #tpu.memory_space<vmem>>, vector<16x1xf32>
      %cst_21 = arith.constant 0.000000e+00 : f32
      %34 = vector.broadcast %cst_21 : f32 to vector<16x1xf32>
      %35 = arith.maximumf %32, %34 : vector<16x1xf32>
      %cst_22 = arith.constant 9.99999974E-6 : f32
      %36 = vector.broadcast %cst_22 : f32 to vector<16x1xf32>
      %37 = arith.addf %35, %36 : vector<16x1xf32>
      %38 = math.rsqrt %37 : vector<16x1xf32>
      %39 = arith.mulf %33, %38 : vector<16x1xf32>
      %c0_23 = arith.constant 0 : index
      %c0_24 = arith.constant 0 : index
      %40 = vector.load %arg8[%c0_23, %c0_24] : memref<16x8xf32, #tpu.memory_space<vmem>>, vector<16x8xf32>
      %41 = vector.broadcast %39 : vector<16x1xf32> to vector<16x8xf32>
      %42 = arith.mulf %41, %40 : vector<16x8xf32>
      %c0_25 = arith.constant 0 : index
      %c0_26 = arith.constant 0 : index
      %43 = vector.load %arg14[%c0_25, %c0_26] : memref<16x8xf32, #tpu.memory_space<vmem>>, vector<16x8xf32>
      tpu.vector_store %arg14[%c0_25, %c0_26], %42 {strides = array<i32>} : memref<16x8xf32, #tpu.memory_space<vmem>>, vector<16x8xf32>,
      %c0_27 = arith.constant 0 : index
      %c0_28 = arith.constant 0 : index
      %44 = vector.load %arg9[%c0_27, %c0_28] : memref<16x1xf32, #tpu.memory_space<vmem>>, vector<16x1xf32>
      %45 = arith.subf %44, %27 : vector<16x1xf32>
      %46 = arith.mulf %39, %45 : vector<16x1xf32>
      %c0_29 = arith.constant 0 : index
      %c0_30 = arith.constant 0 : index
      %47 = vector.load %arg11[%c0_29, %c0_30] : memref<16x1xf32, #tpu.memory_space<vmem>>, vector<16x1xf32>
      %48 = arith.addf %46, %47 : vector<16x1xf32>
      %c0_31 = arith.constant 0 : index
      %c0_32 = arith.constant 0 : index
      %49 = vector.load %arg15[%c0_31, %c0_32] : memref<16x1xf32, #tpu.memory_space<vmem>>, vector<16x1xf32>
      tpu.vector_store %arg15[%c0_31, %c0_32], %48 {strides = array<i32>} : memref<16x1xf32, #tpu.memory_space<vmem>>, vector<16x1xf32>,
    } else {
    }
    return
  }
  func.func @transform_0(%arg0: i32, %arg1: i32, %arg2: i32) -> (i32, i32, i32) {
    %c0_i32 = arith.constant 0 : i32
    %c0_i32_0 = arith.constant 0 : i32
    return %arg1, %c0_i32, %arg2 : i32, i32, i32
  }
  func.func @transform_1(%arg0: i32, %arg1: i32, %arg2: i32) -> (i32, i32) {
    %c0_i32 = arith.constant 0 : i32
    %c0_i32_0 = arith.constant 0 : i32
    %c0_i32_1 = arith.constant 0 : i32
    return %c0_i32, %c0_i32_0 : i32, i32
  }
  func.func @transform_2(%arg0: i32, %arg1: i32, %arg2: i32) -> (i32, i32) {
    %c0_i32 = arith.constant 0 : i32
    %c0_i32_0 = arith.constant 0 : i32
    %c0_i32_1 = arith.constant 0 : i32
    return %c0_i32, %c0_i32_0 : i32, i32
  }
  func.func @transform_3(%arg0: i32, %arg1: i32, %arg2: i32) -> (i32, i32) {
    %c0_i32 = arith.constant 0 : i32
    %c0_i32_0 = arith.constant 0 : i32
    %c0_i32_1 = arith.constant 0 : i32
    return %c0_i32, %c0_i32_0 : i32, i32
  }
  func.func @transform_4(%arg0: i32, %arg1: i32, %arg2: i32) -> (i32, i32) {
    %c0_i32 = arith.constant 0 : i32
    %c0_i32_0 = arith.constant 0 : i32
    %c0_i32_1 = arith.constant 0 : i32
    return %c0_i32, %c0_i32_0 : i32, i32
  }
  func.func @transform_5(%arg0: i32, %arg1: i32, %arg2: i32) -> (i32, i32) {
    %c0_i32 = arith.constant 0 : i32
    %c0_i32_0 = arith.constant 0 : i32
    %c0_i32_1 = arith.constant 0 : i32
    return %c0_i32, %c0_i32_0 : i32, i32
  }
  func.func @transform_6(%arg0: i32, %arg1: i32, %arg2: i32) -> (i32, i32) {
    %c0_i32 = arith.constant 0 : i32
    %c0_i32_0 = arith.constant 0 : i32
    %c0_i32_1 = arith.constant 0 : i32
    return %c0_i32, %c0_i32_0 : i32, i32
  }
  func.func @transform_7(%arg0: i32, %arg1: i32, %arg2: i32) -> (i32, i32) {
    %c0_i32 = arith.constant 0 : i32
    %c0_i32_0 = arith.constant 0 : i32
    %c0_i32_1 = arith.constant 0 : i32
    return %c0_i32, %c0_i32_0 : i32, i32
  }
  func.func @transform_8(%arg0: i32, %arg1: i32, %arg2: i32) -> (i32, i32) {
    %c0_i32 = arith.constant 0 : i32
    %c0_i32_0 = arith.constant 0 : i32
    %c0_i32_1 = arith.constant 0 : i32
    return %c0_i32, %c0_i32_0 : i32, i32
  }
  func.func @transform_9(%arg0: i32, %arg1: i32, %arg2: i32) -> (i32, i32) {
    %c0_i32 = arith.constant 0 : i32
    %c0_i32_0 = arith.constant 0 : i32
    %c0_i32_1 = arith.constant 0 : i32
    return %c0_i32, %c0_i32_0 : i32, i32
  }
  func.func @transform_10(%arg0: i32, %arg1: i32, %arg2: i32) -> (i32, i32) {
    %c0_i32 = arith.constant 0 : i32
    %c0_i32_0 = arith.constant 0 : i32
    %c0_i32_1 = arith.constant 0 : i32
    return %c0_i32, %c0_i32_0 : i32, i32
  }
  func.func @transform_11(%arg0: i32, %arg1: i32, %arg2: i32) -> (i32, i32) {
    %c0_i32 = arith.constant 0 : i32
    %c0_i32_0 = arith.constant 0 : i32
    %c0_i32_1 = arith.constant 0 : i32
    return %c0_i32, %c0_i32_0 : i32, i32
  }
  func.func @transform_12(%arg0: i32, %arg1: i32, %arg2: i32) -> (i32, i32) {
    %c0_i32 = arith.constant 0 : i32
    %c0_i32_0 = arith.constant 0 : i32
    %c0_i32_1 = arith.constant 0 : i32
    return %c0_i32, %c0_i32_0 : i32, i32
  }
}

</mosaic_0001>

<bundles_post_ra>
// kernel: feature_reduction_forward.3
= control target key start
LH: loop header
LB: loop body
LE: loop exit
PB: predicated region body
PF: predicated region fallthrough
CT: control target
= control target key end

     0   :  { %v610_v0 = vmov 2   ;;  %v611_v1 = vmov 0   ;;  %v612_v4 = vmov 3   ;;  %v613_v6 = vmov 1   ;;  %s834_s1 = inlined_call_operand.vmem [shape: f32[8,4], index: 1, kind: input, shape index: {}]   ;;  %s835_s3 = inlined_call_operand.vmem [shape: f32[16,8], index: 3, kind: input, shape index: {}]   ;;  %s836_s2 = inlined_call_operand.vmem [shape: f32[8,1], index: 2, kind: input, shape index: {}]   ;;  %s837_s4 = inlined_call_operand.vmem [shape: f32[16,1], index: 4, kind: input, shape index: {}]   ;;  %s838_s0 = inlined_call_operand.vmem [shape: f32[2,4,256], index: 0, kind: input, shape index: {}]   ;;  %s839_s5 = inlined_call_operand.vmem [shape: f32[2,16,256], index: 5, kind: output, shape index: {}]  }
   0x1   :  { %593 = vset.pattern.permute.xlu1 %v610_v0  ;;  %592 = vset.pattern.permute.xlu0 %v611_v1  ;;  %v22_v2 = vld [vmem:[%s834_s1] sm:$0xff]  ;;  %v229_v7 = vld [vmem:[%s835_s3 + $0x8] sm:$0xff]  ;;  %v614_v8 = vmov 4   ;;  %v615_v9 = vmov 6   ;;  %v616_v10 = vmov 7   ;;  %v617_v11 = vmov 5  }
   0x2   :  { %120 = vperm.xlu1 %593, %v22_v2   ;;  %26 = vperm.xlu0 %592, %v22_v2   ;;  %v228_v3 = vld [vmem:[%s835_s3] sm:$0xff]  ;;  %v231_v13 = vld [vmem:[%s837_s4 + $0x8] sm:$0xff]  ;;  %v31_v14 = vlaneseq }
   0x3   :  { %v23_v5 = vld [vmem:[%s836_s2] sm:$0xff]  ;;  %v21_v23 = vld [vmem:[%s838_s0 + $0x8] sm:$0xff] }
   0x4   :  { %v230_v12 = vld [vmem:[%s837_s4] sm:$0xff]  ;;  %v32_v15 = vshrl.u32 %v31_v14, 7 }
   0x5   :  { %v20_v22 = vld [vmem:[%s838_s0] sm:$0xff] }
   0x6   :  { %594 = vset.pattern.permute.xlu1 %v612_v4  ;;  %234 = vperm.xlu0 %592, %v228_v3   ;;  %v666_v16 = vsub.s32 0, %v32_v15  ;;  %v668_v17 = vsub.s32 4, %v32_v15  ;;  %v670_v18 = vsub.s32 1, %v32_v15  ;;  %v672_v19 = vsub.s32 5, %v32_v15 }
   0x7   :  { %168 = vperm.xlu1 %594, %v22_v2   ;;  %v674_v20 = vsub.s32 2, %v32_v15  ;;  %v676_v21 = vsub.s32 6, %v32_v15  ;;  %v688_v30 = vsub.s32 3, %v32_v15  ;;  %v690_v31 = vsub.s32 7, %v32_v15 }
   0x8   :  { %v34_v26 = vrot.slane %v20_v22, %v666_v16  ;;  %v38_v27 = vrot.slane %v20_v22, %v668_v17  ;;  %v42_v28 = vrot.slane %v21_v23, %v666_v16  ;;  %v46_v29 = vrot.slane %v21_v23, %v668_v17 }
   0x9   :  { %v78_v32 = vrot.slane %v20_v22, %v670_v18  ;;  %v82_v33 = vrot.slane %v20_v22, %v672_v19  ;;  %v86_v34 = vrot.slane %v21_v23, %v670_v18  ;;  %v90_v35 = vrot.slane %v21_v23, %v672_v19 }
   0xa   :  { %596 = vset.pattern.permute.xlu0 %v613_v6  ;;  %v126_v36 = vrot.slane %v20_v22, %v674_v20  ;;  %v130_v37 = vrot.slane %v20_v22, %v676_v21  ;;  %v134_v38 = vrot.slane %v21_v23, %v674_v20  ;;  %v138_v39 = vrot.slane %v21_v23, %v676_v21 }
   0xb   :  { %595 = vset.pattern.permute.xlu1 %v611_v1  ;;  %72 = vperm.xlu0 %596, %v22_v2   ;;  %v54_v40 = vrot.slane %v34_v26, %v666_v16  ;;  %v58_v41 = vrot.slane %v38_v27, %v666_v16  ;;  %v62_v42 = vrot.slane %v42_v28, %v666_v16 }
   0xc   :  { %217 = vperm.xlu1 %595, %v23_v5   ;;  %v66_v43 = vrot.slane %v46_v29, %v666_v16  ;;  %v174_v46 = vrot.slane %v20_v22, %v688_v30  ;;  %v178_v47 = vrot.slane %v20_v22, %v690_v31  ;;  %v182_v48 = vrot.slane %v21_v23, %v688_v30 }
   0xd   :  { %v186_v49 = vrot.slane %v21_v23, %v690_v31  ;;  %v98_v50 = vrot.slane %v78_v32, %v670_v18  ;;  %v102_v51 = vrot.slane %v82_v33, %v670_v18  ;;  %v106_v52 = vrot.slane %v86_v34, %v670_v18 }
   0xe   :  { %v110_v53 = vrot.slane %v90_v35, %v670_v18  ;;  %v146_v54 = vrot.slane %v126_v36, %v674_v20  ;;  %v150_v55 = vrot.slane %v130_v37, %v674_v20  ;;  %v154_v56 = vrot.slane %v134_v38, %v674_v20 }
   0xf   :  { %271 = vperm.xlu0 %596, %v229_v7   ;;  %v158_v57 = vrot.slane %v138_v39, %v674_v20  ;;  %v194_v62 = vrot.slane %v174_v46, %v688_v30  ;;  %v198_v63 = vrot.slane %v178_v47, %v688_v30 }
  0x10   :  { %239 = vperm.xlu1 %595, %v229_v7  }
  0x13   :  { %599 = vset.pattern.permute.xlu0 %v612_v4 }
  0x14   :  { %597 = vset.pattern.permute.xlu1 %v613_v6  ;;  %347 = vperm.xlu0 %599, %v228_v3  }
  0x15   :  { %267 = vperm.xlu1 %597, %v228_v3  }
  0x18   :  { %602 = vset.pattern.permute.xlu0 %v614_v8 }
  0x19   :  { %598 = vset.pattern.permute.xlu1 %v610_v0  ;;  %391 = vperm.xlu0 %602, %v229_v7   ;;  %v202_v0 = vrot.slane %v182_v48, %v688_v30 }
  0x1a   :  { %307 = vperm.xlu1 %598, %v228_v3  }
  0x1d   :  { %604 = vset.pattern.permute.xlu0 %v615_v9 }
  0x1e   :  { %311 = vperm.xlu1 %598, %v229_v7   ;;  %467 = vperm.xlu0 %604, %v228_v3  }
  0x22   :  { %600 = vset.pattern.permute.xlu1 %v612_v4  ;;  %607 = vset.pattern.permute.xlu0 %v616_v10 }
  0x23   :  { %351 = vperm.xlu1 %600, %v229_v7   ;;  %511 = vperm.xlu0 %607, %v229_v7  }
  0x27   :  { %601 = vset.pattern.permute.xlu1 %v614_v8  ;;  %609 = vset.pattern.permute.xlu0 %v611_v1 }
  0x28   :  { %387 = vperm.xlu1 %601, %v228_v3  }
  0x2c   :  { %603 = vset.pattern.permute.xlu1 %v617_v11 }
  0x2d   :  { %427 = vperm.xlu1 %603, %v228_v3  }
  0x31   :  { %431 = vperm.xlu1 %603, %v229_v7  }
  0x35   :  { %605 = vset.pattern.permute.xlu1 %v615_v9 }
  0x36   :  { %471 = vperm.xlu1 %605, %v229_v7  }
  0x3a   :  { %606 = vset.pattern.permute.xlu1 %v616_v10 }
  0x3b   :  { %507 = vperm.xlu1 %606, %v228_v3  }
  0x3f   :  { %608 = vset.pattern.permute.xlu1 %v611_v1  ;;  %v206_v1 = vrot.slane %v186_v49, %v688_v30 }
  0x40   :  { %548 = vperm.xlu1 %608, %v230_v12  }
  0x44   :  { %553 = vperm.xlu1 %608, %v231_v13  }
  0x7d   :  { %v121_v24 = vpop.permute.xlu1 %120  ;;  %v27_v25 = vpop.permute.xlu0 %26 }
  0x7e   :  { %v67_v58 = vmul.f32 %v54_v40, %v27_v25  ;;  %v68_v59 = vmul.f32 %v58_v41, %v27_v25  ;;  %v69_v60 = vmul.f32 %v62_v42, %v27_v25  ;;  %v70_v61 = vmul.f32 %v66_v43, %v27_v25 }
  0x7f   :  { %v159_v8 = vmul.f32 %v146_v54, %v121_v24  ;;  %v160_v9 = vmul.f32 %v150_v55, %v121_v24  ;;  %v161_v10 = vmul.f32 %v154_v56, %v121_v24  ;;  %v162_v11 = vmul.f32 %v158_v57, %v121_v24 }
  0x81   :  { %v704_v44 = vpop.permute.xlu0 %234 }
  0x82   :  { %v169_v45 = vpop.permute.xlu1 %168 }
  0x83   :  { %v207_v22 = vmul.f32 %v194_v62, %v169_v45  ;;  %v208_v23 = vmul.f32 %v198_v63, %v169_v45  ;;  %v209_v25 = vmul.f32 %v202_v0, %v169_v45  ;;  %v210_v26 = vmul.f32 %v206_v1, %v169_v45 }
  0x86   :  { %v73_v2 = vpop.permute.xlu0 %72 }
  0x87   :  { %v111_v3 = vmul.f32 %v98_v50, %v73_v2  ;;  %v112_v4 = vmul.f32 %v102_v51, %v73_v2  ;;  %v113_v5 = vmul.f32 %v106_v52, %v73_v2  ;;  %v114_v6 = vmul.f32 %v110_v53, %v73_v2  ;;  %v218_v7 = vpop.permute.xlu1 %217 }
  0x89   :  { %v115_v12 = vadd.f32 %v111_v3, %v67_v58  ;;  %v116_v13 = vadd.f32 %v112_v4, %v68_v59  ;;  %v117_v14 = vadd.f32 %v113_v5, %v69_v60  ;;  %v118_v15 = vadd.f32 %v114_v6, %v70_v61 }
  0x8a   :  { %v272_v51 = vpop.permute.xlu0 %271 }
  0x8b   :  { %v163_v27 = vadd.f32 %v159_v8, %v115_v12  ;;  %v164_v28 = vadd.f32 %v160_v9, %v116_v13  ;;  %v165_v29 = vadd.f32 %v161_v10, %v117_v14  ;;  %v166_v32 = vadd.f32 %v162_v11, %v118_v15  ;;  %v240_v33 = vpop.permute.xlu1 %239 }
  0x8d   :  { %v211_v34 = vadd.f32 %v207_v22, %v163_v27  ;;  %v212_v35 = vadd.f32 %v208_v23, %v164_v28  ;;  %v213_v36 = vadd.f32 %v209_v25, %v165_v29  ;;  %v214_v37 = vadd.f32 %v210_v26, %v166_v32 }
  0x8f   :  { %v220_v38 = vadd.f32 %v218_v7, %v211_v34  ;;  %v221_v39 = vadd.f32 %v218_v7, %v212_v35  ;;  %v222_v24 = vadd.f32 %v218_v7, %v213_v36  ;;  %v223_v40 = vadd.f32 %v218_v7, %v214_v37  ;;  %v348_v5 = vpop.permute.xlu0 %347 }
  0x90   :  { %v268_v41 = vpop.permute.xlu1 %267 }
  0x91   :  { %v722_v42 = vmax.f32 %v220_v38, 0.0  ;;  %v724_v43 = vmax.f32 %v221_v39, 0.0  ;;  %v726_v46 = vmax.f32 %v222_v24, 0.0  ;;  %v728_v45 = vmax.f32 %v223_v40, 0.0 }
  0x93   :  { %v245_v47 = vrot.slane %v722_v42, %v666_v16  ;;  %v249_v48 = vrot.slane %v724_v43, %v666_v16  ;;  %v253_v49 = vrot.slane %v726_v46, %v666_v16  ;;  %v257_v50 = vrot.slane %v728_v45, %v666_v16 }
  0x94   :  { %v277_v52 = vrot.slane %v722_v42, %v670_v18  ;;  %v281_v53 = vrot.slane %v724_v43, %v670_v18  ;;  %v285_v54 = vrot.slane %v726_v46, %v670_v18  ;;  %v289_v55 = vrot.slane %v728_v45, %v670_v18  ;;  %v392_v37 = vpop.permute.xlu0 %391 }
  0x95   :  { %v308_v56 = vpop.permute.xlu1 %307  ;;  %v260_v57 = vmul.f32 %v245_v47, %v240_v33  ;;  %v261_v58 = vmul.f32 %v249_v48, %v240_v33  ;;  %v264_v59 = vmul.f32 %v253_v49, %v240_v33  ;;  %v265_v60 = vmul.f32 %v257_v50, %v240_v33 }
  0x96   :  { %v292_v61 = vmul.f32 %v277_v52, %v272_v51  ;;  %v293_v16 = vmul.f32 %v281_v53, %v272_v51  ;;  %v296_v62 = vmul.f32 %v285_v54, %v272_v51  ;;  %v297_v63 = vmul.f32 %v289_v55, %v272_v51 }
  0x97   :  { %v258_v1 = vmul.f32 %v245_v47, %v704_v44  ;;  %v259_v2 = vmul.f32 %v249_v48, %v704_v44  ;;  %v262_v3 = vmul.f32 %v253_v49, %v704_v44  ;;  %v263_v4 = vmul.f32 %v257_v50, %v704_v44 }
  0x98   :  { %v300_v18 = vadd.f32 %v292_v61, %v260_v57  ;;  %v301_v6 = vadd.f32 %v293_v16, %v261_v58  ;;  %v304_v7 = vadd.f32 %v296_v62, %v264_v59  ;;  %v305_v8 = vadd.f32 %v297_v63, %v265_v60 }
  0x99   :  { %v312_v0 = vpop.permute.xlu1 %311  ;;  %v290_v9 = vmul.f32 %v277_v52, %v268_v41  ;;  %v291_v10 = vmul.f32 %v281_v53, %v268_v41  ;;  %v294_v11 = vmul.f32 %v285_v54, %v268_v41  ;;  %v295_v12 = vmul.f32 %v289_v55, %v268_v41  ;;  %v468_v61 = vpop.permute.xlu0 %467 }
  0x9a   :  { %v357_v13 = vrot.slane %v722_v42, %v688_v30  ;;  %v361_v14 = vrot.slane %v724_v43, %v688_v30  ;;  %v365_v15 = vrot.slane %v726_v46, %v688_v30  ;;  %v369_v44 = vrot.slane %v728_v45, %v688_v30 }
  0x9b   :  { %v317_v22 = vrot.slane %v722_v42, %v674_v20  ;;  %v321_v23 = vrot.slane %v724_v43, %v674_v20  ;;  %v325_v25 = vrot.slane %v726_v46, %v674_v20  ;;  %v329_v26 = vrot.slane %v728_v45, %v674_v20 }
  0x9c   :  { %v397_v28 = vrot.slane %v722_v42, %v668_v17  ;;  %v401_v29 = vrot.slane %v724_v43, %v668_v17  ;;  %v405_v30 = vrot.slane %v726_v46, %v668_v17  ;;  %v409_v32 = vrot.slane %v728_v45, %v668_v17 }
  0x9d   :  { %v298_v33 = vadd.f32 %v290_v9, %v258_v1  ;;  %v299_v34 = vadd.f32 %v291_v10, %v259_v2  ;;  %v302_v35 = vadd.f32 %v294_v11, %v262_v3  ;;  %v303_v36 = vadd.f32 %v295_v12, %v263_v4 }
  0x9e   :  { %v352_v27 = vpop.permute.xlu1 %351  ;;  %v330_v38 = vmul.f32 %v317_v22, %v308_v56  ;;  %v331_v20 = vmul.f32 %v321_v23, %v308_v56  ;;  %v334_v39 = vmul.f32 %v325_v25, %v308_v56  ;;  %v335_v24 = vmul.f32 %v329_v26, %v308_v56 }
  0x9f   :  { %v370_v40 = vmul.f32 %v357_v13, %v348_v5  ;;  %v371_v41 = vmul.f32 %v361_v14, %v348_v5  ;;  %v374_v47 = vmul.f32 %v365_v15, %v348_v5  ;;  %v375_v48 = vmul.f32 %v369_v44, %v348_v5 }
  0xa0   :  { %v774_v49 = vmul.f32 %v397_v28, %v392_v37  ;;  %v776_v50 = vmul.f32 %v401_v29, %v392_v37  ;;  %v778_v51 = vmul.f32 %v405_v30, %v392_v37  ;;  %v780_v17 = vmul.f32 %v409_v32, %v392_v37 }
  0xa1   :  { %v332_v53 = vmul.f32 %v317_v22, %v312_v0  ;;  %v333_v54 = vmul.f32 %v321_v23, %v312_v0  ;;  %v336_v55 = vmul.f32 %v325_v25, %v312_v0  ;;  %v337_v57 = vmul.f32 %v329_v26, %v312_v0 }
  0xa2   :  { %v338_v58 = vadd.f32 %v330_v38, %v298_v33  ;;  %v339_v59 = vadd.f32 %v331_v20, %v299_v34  ;;  %v342_v56 = vadd.f32 %v334_v39, %v302_v35  ;;  %v343_v60 = vadd.f32 %v335_v24, %v303_v36 }
  0xa3   :  { %v388_v52 = vpop.permute.xlu1 %387  ;;  %v372_v16 = vmul.f32 %v357_v13, %v352_v27  ;;  %v373_v62 = vmul.f32 %v361_v14, %v352_v27  ;;  %v376_v63 = vmul.f32 %v365_v15, %v352_v27  ;;  %v377_v1 = vmul.f32 %v369_v44, %v352_v27 }
  0xa4   :  { %v477_v2 = vrot.slane %v722_v42, %v676_v21  ;;  %v481_v3 = vrot.slane %v724_v43, %v676_v21  ;;  %v485_v4 = vrot.slane %v726_v46, %v676_v21  ;;  %v489_v0 = vrot.slane %v728_v45, %v676_v21 }
  0xa5   :  { %v340_v5 = vadd.f32 %v332_v53, %v300_v18  ;;  %v341_v9 = vadd.f32 %v333_v54, %v301_v6  ;;  %v344_v10 = vadd.f32 %v336_v55, %v304_v7  ;;  %v345_v11 = vadd.f32 %v337_v57, %v305_v8 }
  0xa6   :  { %v490_v13 = vmul.f32 %v477_v2, %v468_v61  ;;  %v491_v14 = vmul.f32 %v481_v3, %v468_v61  ;;  %v494_v15 = vmul.f32 %v485_v4, %v468_v61  ;;  %v495_v44 = vmul.f32 %v489_v0, %v468_v61 }
  0xa7   :  { %v380_v22 = vadd.f32 %v372_v16, %v340_v5  ;;  %v381_v23 = vadd.f32 %v373_v62, %v341_v9  ;;  %v384_v25 = vadd.f32 %v376_v63, %v344_v10  ;;  %v385_v26 = vadd.f32 %v377_v1, %v345_v11 }
  0xa8   :  { %v428_v12 = vpop.permute.xlu1 %427  ;;  %v410_v27 = vmul.f32 %v397_v28, %v388_v52  ;;  %v411_v33 = vmul.f32 %v401_v29, %v388_v52  ;;  %v414_v34 = vmul.f32 %v405_v30, %v388_v52  ;;  %v415_v35 = vmul.f32 %v409_v32, %v388_v52 }
  0xa9   :  { %v437_v21 = vrot.slane %v722_v42, %v672_v19  ;;  %v441_v18 = vrot.slane %v724_v43, %v672_v19  ;;  %v445_v6 = vrot.slane %v726_v46, %v672_v19  ;;  %v449_v7 = vrot.slane %v728_v45, %v672_v19 }
  0xaa   :  { %v378_v36 = vadd.f32 %v370_v40, %v338_v58  ;;  %v379_v37 = vadd.f32 %v371_v41, %v339_v59  ;;  %v382_v38 = vadd.f32 %v374_v47, %v342_v56  ;;  %v383_v28 = vadd.f32 %v375_v48, %v343_v60 }
  0xab   :  { %v450_v29 = vmul.f32 %v437_v21, %v428_v12  ;;  %v451_v30 = vmul.f32 %v441_v18, %v428_v12  ;;  %v454_v32 = vmul.f32 %v445_v6, %v428_v12  ;;  %v455_v20 = vmul.f32 %v449_v7, %v428_v12 }
  0xac   :  { %v432_v8 = vpop.permute.xlu1 %431  ;;  %v517_v39 = vrot.slane %v722_v42, %v690_v31  ;;  %v521_v24 = vrot.slane %v724_v43, %v690_v31  ;;  %v525_v52 = vrot.slane %v726_v46, %v690_v31  ;;  %v529_v19 = vrot.slane %v728_v45, %v690_v31 }
  0xad   :  { %v418_v40 = vadd.f32 %v410_v27, %v378_v36  ;;  %v419_v41 = vadd.f32 %v411_v33, %v379_v37  ;;  %v422_v47 = vadd.f32 %v414_v34, %v382_v38  ;;  %v423_v48 = vadd.f32 %v415_v35, %v383_v28 }
  0xae   :  { %v452_v53 = vmul.f32 %v437_v21, %v432_v8  ;;  %v453_v54 = vmul.f32 %v441_v18, %v432_v8  ;;  %v456_v55 = vmul.f32 %v445_v6, %v432_v8  ;;  %v457_v57 = vmul.f32 %v449_v7, %v432_v8 }
  0xaf   :  { %v458_v59 = vadd.f32 %v450_v29, %v418_v40  ;;  %v459_v42 = vadd.f32 %v451_v30, %v419_v41  ;;  %v462_v56 = vadd.f32 %v454_v32, %v422_v47  ;;  %v463_v60 = vadd.f32 %v455_v20, %v423_v48 }
  0xb0   :  { %v420_v43 = vadd.f32 %v774_v49, %v380_v22  ;;  %v421_v46 = vadd.f32 %v776_v50, %v381_v23  ;;  %v424_v61 = vadd.f32 %v778_v51, %v384_v25  ;;  %v425_v31 = vadd.f32 %v780_v17, %v385_v26  ;;  %v512_v51 = vpop.permute.xlu0 %511 }
  0xb1   :  { %v472_v58 = vpop.permute.xlu1 %471  ;;  %v498_v12 = vadd.f32 %v490_v13, %v458_v59  ;;  %v499_v27 = vadd.f32 %v491_v14, %v459_v42  ;;  %v502_v33 = vadd.f32 %v494_v15, %v462_v56  ;;  %v503_v34 = vadd.f32 %v495_v44, %v463_v60 }
  0xb2   :  { %v492_v45 = vmul.f32 %v477_v2, %v472_v58  ;;  %v493_v16 = vmul.f32 %v481_v3, %v472_v58  ;;  %v496_v62 = vmul.f32 %v485_v4, %v472_v58  ;;  %v497_v63 = vmul.f32 %v489_v0, %v472_v58 }
  0xb3   :  { %v460_v1 = vadd.f32 %v452_v53, %v420_v43  ;;  %v461_v5 = vadd.f32 %v453_v54, %v421_v46  ;;  %v464_v9 = vadd.f32 %v456_v55, %v424_v61  ;;  %v465_v10 = vadd.f32 %v457_v57, %v425_v31 }
  0xb4   :  { %v532_v21 = vmul.f32 %v517_v39, %v512_v51  ;;  %v533_v18 = vmul.f32 %v521_v24, %v512_v51  ;;  %v536_v6 = vmul.f32 %v525_v52, %v512_v51  ;;  %v537_v13 = vmul.f32 %v529_v19, %v512_v51 }
  0xb5   :  { %v500_v25 = vadd.f32 %v492_v45, %v460_v1  ;;  %v501_v17 = vadd.f32 %v493_v16, %v461_v5  ;;  %v504_v2 = vadd.f32 %v496_v62, %v464_v9  ;;  %v505_v3 = vadd.f32 %v497_v63, %v465_v10 }
  0xb6   :  { %v508_v11 = vpop.permute.xlu1 %507 }
  0xb7   :  { %v530_v49 = vmul.f32 %v517_v39, %v508_v11  ;;  %v531_v22 = vmul.f32 %v521_v24, %v508_v11  ;;  %v534_v50 = vmul.f32 %v525_v52, %v508_v11  ;;  %v535_v23 = vmul.f32 %v529_v19, %v508_v11 }
  0xb8   :  { %v540_v36 = vadd.f32 %v532_v21, %v500_v25  ;;  %v541_v37 = vadd.f32 %v533_v18, %v501_v17  ;;  %v544_v38 = vadd.f32 %v536_v6, %v504_v2  ;;  %v545_v28 = vadd.f32 %v537_v13, %v505_v3 }
  0xb9   :  { %v538_v4 = vadd.f32 %v530_v49, %v498_v12  ;;  %v539_v0 = vadd.f32 %v531_v22, %v499_v27  ;;  %v542_v26 = vadd.f32 %v534_v50, %v502_v33  ;;  %v543_v35 = vadd.f32 %v535_v23, %v503_v34 }
  0xbb   :  { %v549_v14 = vpop.permute.xlu1 %548 }
  0xbc   :  { %v556_v15 = vadd.f32 %v549_v14, %v538_v4  ;;  %v557_v44 = vadd.f32 %v549_v14, %v539_v0  ;;  %v560_v7 = vadd.f32 %v549_v14, %v542_v26  ;;  %v561_v8 = vadd.f32 %v549_v14, %v543_v35 }
  0xbe   :  { %v564_v29 = vmax.f32 %v556_v15, 0.0  ;;  %v565_v30 = vmax.f32 %v557_v44, 0.0  ;;  %v568_v32 = vmax.f32 %v560_v7, 0.0  ;;  %v569_v20 = vmax.f32 %v561_v8, 0.0 }
  0xbf   :  { %v554_v40 = vpop.permute.xlu1 %553 }
  0xc0   :  { %572 = vst [vmem:[%s839_s5] sm:$0xff] %v564_v29  ;;  %573 = vst [vmem:[%s839_s5 + $0x8] sm:$0xff] %v565_v30  ;;  %v558_v39 = vadd.f32 %v554_v40, %v540_v36  ;;  %v559_v24 = vadd.f32 %v554_v40, %v541_v37  ;;  %v562_v52 = vadd.f32 %v554_v40, %v544_v38 }
  0xc1   :  { %576 = vst [vmem:[%s839_s5 + $0x20] sm:$0xff] %v568_v32  ;;  %577 = vst [vmem:[%s839_s5 + $0x28] sm:$0xff] %v569_v20  ;;  %v563_v19 = vadd.f32 %v554_v40, %v545_v28 }
  0xc2   :  { %v566_v41 = vmax.f32 %v558_v39, 0.0  ;;  %v567_v47 = vmax.f32 %v559_v24, 0.0  ;;  %v570_v48 = vmax.f32 %v562_v52, 0.0 }
  0xc3   :  { %v571_v53 = vmax.f32 %v563_v19, 0.0 }
  0xc4   :  { %574 = vst [vmem:[%s839_s5 + $0x10] sm:$0xff] %v566_v41  ;;  %575 = vst [vmem:[%s839_s5 + $0x18] sm:$0xff] %v567_v47 }
  0xc5   :  { %578 = vst [vmem:[%s839_s5 + $0x30] sm:$0xff] %v570_v48  ;;  %579 = vst [vmem:[%s839_s5 + $0x38] sm:$0xff] %v571_v53 }

// kernel: feature_reduction_forward.2
= control target key start
LH: loop header
LB: loop body
LE: loop exit
PB: predicated region body
PF: predicated region fallthrough
CT: control target
= control target key end

     0   :  { %s1609_s21 = smov 0   ;;  %s1611_s22 = smov 0   ;;  %s1904_s0 = inlined_call_operand.vmem [shape: f32[2,4,256], index: 0, kind: input, shape index: {}]   ;;  %s1905_s1 = inlined_call_operand.vmem [shape: f32[8,4], index: 1, kind: input, shape index: {}]   ;;  %s1906_s2 = inlined_call_operand.vmem [shape: f32[8,1], index: 2, kind: input, shape index: {}]   ;;  %s1907_s3 = inlined_call_operand.vmem [shape: f32[8,1], index: 3, kind: input, shape index: {}]   ;;  %s1908_s4 = inlined_call_operand.vmem [shape: f32[8,1], index: 4, kind: input, shape index: {}]   ;;  %s1909_s5 = inlined_call_operand.vmem [shape: f32[16,8], index: 5, kind: input, shape index: {}]   ;;  %s1910_s6 = inlined_call_operand.vmem [shape: f32[16,1], index: 6, kind: input, shape index: {}]   ;;  %s1911_s7 = inlined_call_operand.vmem [shape: f32[16,1], index: 7, kind: input, shape index: {}]   ;;  %s1912_s8 = inlined_call_operand.vmem [shape: f32[16,1], index: 8, kind: input, shape index: {}]   ;;  %s1913_s9 = inlined_call_operand.vmem [shape: f32[8,4], index: 9, kind: output, shape index: {0}]   ;;  %s1914_s10 = inlined_call_operand.vmem [shape: f32[8,1], index: 10, kind: output, shape index: {1}]   ;;  %s1915_s11 = inlined_call_operand.vmem [shape: f32[16,8], index: 11, kind: output, shape index: {2}]   ;;  %s1916_s12 = inlined_call_operand.vmem [shape: f32[16,1], index: 12, kind: output, shape index: {3}]  }
   0x1   :  { %s1613_s23 = smov 0  }
   0x2 LB: > { %s42_s24 = sadd.s32 1, %s1523_s22  ;;  %p1421_p0 = scmp.ge.s32.totalorder %s1527_s23, 1  ;;  %s1527_s23 = sphi %s1613_s23, %s23_s23   ;;  %s1523_s22 = sphi %s1611_s22, %s1918_s22   ;;  %s1519_s21 = sphi %s1609_s21, %s1917_s21  }
   0x3   : > { %p44_p1 = scmp.ge.s32.totalorder %s42_s24, 2  ;;  %p377_p2 = scmp.lt.s32.totalorder %s1527_s23, 3 }
   0x5   : > { %s1920_s24 = smov (%p44_p1, %s42_s24), 0  ;;  %p378_p3 = pnand %p1421_p0, %p377_p2 }
   0x6   : > { %p435_p4 = scmp.eq.s32.totalorder (!%p378_p3), %s1519_s21, 0 }
   0x7   : > { %381 = sbr.rel (%p378_p3) target bundleno = 978 (0x3d2), region = 56 }
   0xc   : > { %439 = sbr.rel (!%p435_p4) target bundleno = 17 (0x11), region = 60  ;;  %vm440_vm0 = vcmask (%p435_p4), 7168   ;;  %v1529_v0 = vmov (%p435_p4), 0.0  }
   0xd   : > { %441 = vst.msk [vmem:[#allocation2] sm:$0xff] (%p435_p4), %vm440_vm0, %v1529_v0  ;;  %442 = vst.msk [vmem:[#allocation3] sm:$0xff] (%p435_p4), %vm440_vm0, %v1529_v0 }
   0xe   : > { %443 = vst.msk [vmem:[#allocation4] sm:$0xff] (%p435_p4), %vm440_vm0, %v1529_v0  ;;  %444 = vst.msk [vmem:[#allocation4 + $0x8] sm:$0xff] (%p435_p4), %vm440_vm0, %v1529_v0 }
   0xf   : > { %445 = vst.msk [vmem:[#allocation5] sm:$0xff] (%p435_p4), %vm440_vm0, %v1529_v0  ;;  %446 = vst.msk [vmem:[#allocation5 + $0x8] sm:$0xff] (%p435_p4), %vm440_vm0, %v1529_v0 }
  0x11 PF: > { %p447_p5 = scmp.eq.s32.totalorder %s1519_s21, 1 }
  0x12   : > { %v1530_v3 = vmov (%p447_p5), 0   ;;  %v472_v10 = vld [vmem:[%s1906_s2] sm:$0xff] (%p447_p5)  ;;  %vm477_vm1 = vcmask (%p447_p5), 7168   ;;  %vm470_vm2 = vcmask (%p447_p5), 31744  }
  0x13   : > { %451 = sbr.rel (!%p447_p5) target bundleno = 174 (0xae), region = 64  ;;  %1473 = vset.pattern.permute.xlu0 (%p447_p5), %v1530_v3  ;;  %v458_v11 = vld [vmem:[%s1907_s3] sm:$0xff] (%p447_p5) }
  0x14   : > { %v452_v1 = vld [vmem:[#allocation2] sm:$0xff] (%p447_p5)  ;;  %v454_v2 = vld [vmem:[#allocation3] sm:$0xff] (%p447_p5) }
  0x15   : > { %v453_v4 = vmul.f32 (%p447_p5), 0.001953125, %v452_v1  ;;  %v455_v5 = vmul.f32 (%p447_p5), 0.001953125, %v454_v2  ;;  %v475_v15 = vld [vmem:[%s1908_s4] sm:$0xff] (%p447_p5) }
  0x16   : > { %v463_v18 = vld [vmem:[%s1905_s1] sm:$0xff] (%p447_p5) }
  0x17   : > { %v456_v6 = vmul.f32 (%p447_p5), %v453_v4, %v453_v4  ;;  %v473_v12 = vsub.f32 (%p447_p5), %v472_v10, %v453_v4 }
  0x19   : > { %v457_v7 = vsub.f32 %v455_v5, %v456_v6 }
  0x1b   : > { %v459_v8 = vmax.f32 %v457_v7, 0.0 }
  0x1d   : > { %v460_v9 = vadd.f32 1e-05, %v459_v8 }
  0x1f   : > { %1474 = vrsqrt.f32 %v460_v9 }
  0x2c   : > { %v1475_v13 = vpop.eup %1474 }
  0x2d   : > { %v462_v14 = vmul.f32 %v1475_v13, %v458_v11 }
  0x2f   : > { %466 = vperm.xlu0 %1473, %v462_v14   ;;  %v474_v16 = vmul.f32 %v473_v12, %v462_v14 }
  0x31   : > { %v476_v17 = vadd.f32 %v475_v15, %v474_v16 }
  0x33   : > { %478 = vst.msk [vmem:[%s1914_s10] sm:$0xff] %vm477_vm1, %v476_v17 }
  0xaa   : > { %v467_v19 = vpop.permute.xlu0 %466 }
  0xab   : > { %v469_v20 = vmul.f32 %v467_v19, %v463_v18 }
  0xad   : > { %471 = vst.msk [vmem:[%s1913_s9] sm:$0xff] %vm470_vm2, %v469_v20 }
  0xae PF: > { %v1654_v21 = vld [vmem:[%s1904_s0] sm:$0xff]  ;;  %v1659_v22 = vld [vmem:[%s1904_s0 + $0x8] sm:$0xff]  ;;  %p1424_p6 = scmp.ne.s32.totalorder %s1519_s21, 0 }
  0xb0   : > { %483 = sbr.rel (%p1424_p6) target bundleno = 470 (0x1d6), region = 68 }
  0xb5   : > { %v484_v23 = vld [vmem:[%s1905_s1] sm:$0xff]  ;;  %v1531_v24 = vmov 0   ;;  %v1532_v25 = vmov 2   ;;  %v1533_v26 = vmov 1   ;;  %v1534_v27 = vmov 3  }
  0xb6   : > { %1476 = vset.pattern.permute.xlu0 %v1531_v24  ;;  %1478 = vset.pattern.permute.xlu1 %v1532_v25  ;;  %v485_v28 = vld [vmem:[%s1906_s2] sm:$0xff]  ;;  %v493_v29 = vlaneseq  ;;  %vm697_vm3 = vcmask 7168  }
  0xb7   : > { %488 = vperm.xlu0 %1476, %v484_v23   ;;  %582 = vperm.xlu1 %1478, %v484_v23  }
  0xb8   : > { %v494_v30 = vshrl.u32 %v493_v29, 7 }
  0xba   : > { %v495_v31 = vsub.s32 0, %v494_v30  ;;  %v499_v32 = vsub.s32 4, %v494_v30  ;;  %v587_v33 = vsub.s32 2, %v494_v30  ;;  %v591_v34 = vsub.s32 6, %v494_v30 }
  0xbb   : > { %1477 = vset.pattern.permute.xlu0 %v1533_v26  ;;  %1479 = vset.pattern.permute.xlu1 %v1534_v27  ;;  %v539_v35 = vsub.s32 1, %v494_v30  ;;  %v543_v36 = vsub.s32 5, %v494_v30  ;;  %v635_v37 = vsub.s32 3, %v494_v30  ;;  %v639_v38 = vsub.s32 7, %v494_v30 }
  0xbc   : > { %534 = vperm.xlu0 %1477, %v484_v23   ;;  %630 = vperm.xlu1 %1479, %v484_v23   ;;  %v496_v39 = vrot.slane %v1654_v21, %v495_v31  ;;  %v500_v40 = vrot.slane %v1654_v21, %v499_v32  ;;  %v504_v41 = vrot.slane %v1659_v22, %v495_v31 }
  0xbd   : > { %v508_v42 = vrot.slane %v1659_v22, %v499_v32  ;;  %v588_v43 = vrot.slane %v1654_v21, %v587_v33  ;;  %v592_v44 = vrot.slane %v1654_v21, %v591_v34  ;;  %v596_v45 = vrot.slane %v1659_v22, %v587_v33 }
  0xbe   : > { %v600_v46 = vrot.slane %v1659_v22, %v591_v34  ;;  %v540_v47 = vrot.slane %v1654_v21, %v539_v35  ;;  %v544_v48 = vrot.slane %v1654_v21, %v543_v36  ;;  %v548_v49 = vrot.slane %v1659_v22, %v539_v35 }
  0xbf   : > { %v552_v50 = vrot.slane %v1659_v22, %v543_v36  ;;  %v636_v51 = vrot.slane %v1654_v21, %v635_v37  ;;  %v640_v52 = vrot.slane %v1654_v21, %v639_v38  ;;  %v644_v53 = vrot.slane %v1659_v22, %v635_v37 }
  0xc0   : > { %1480 = vset.pattern.permute.xlu1 %v1531_v24  ;;  %1481 = vset.pattern.permute.xlu0 %v1531_v24  ;;  %v648_v54 = vrot.slane %v1659_v22, %v639_v38  ;;  %v516_v55 = vrot.slane %v496_v39, %v495_v31  ;;  %v520_v56 = vrot.slane %v500_v40, %v495_v31 }
  0xc1   : > { %679 = vperm.xlu1 %1480, %v485_v28   ;;  %v524_v57 = vrot.slane %v504_v41, %v495_v31  ;;  %v528_v58 = vrot.slane %v508_v42, %v495_v31  ;;  %v608_v61 = vrot.slane %v588_v43, %v587_v33  ;;  %v612_v62 = vrot.slane %v592_v44, %v587_v33 }
  0xc2   : > { %v616_v63 = vrot.slane %v596_v45, %v587_v33  ;;  %v620_v0 = vrot.slane %v600_v46, %v587_v33  ;;  %v560_v1 = vrot.slane %v540_v47, %v539_v35  ;;  %v564_v2 = vrot.slane %v544_v48, %v539_v35 }
  0xc3   : > { %v568_v3 = vrot.slane %v548_v49, %v539_v35  ;;  %v572_v4 = vrot.slane %v552_v50, %v539_v35  ;;  %v656_v5 = vrot.slane %v636_v51, %v635_v37  ;;  %v660_v6 = vrot.slane %v640_v52, %v635_v37 }
  0xc4   : > { %v664_v7 = vrot.slane %v644_v53, %v635_v37  ;;  %v668_v8 = vrot.slane %v648_v54, %v635_v37 }
 0x132   : > { %v489_v59 = vpop.permute.xlu0 %488  ;;  %v583_v60 = vpop.permute.xlu1 %582 }
 0x133   : > { %v529_v9 = vmul.f32 %v516_v55, %v489_v59  ;;  %v530_v10 = vmul.f32 %v520_v56, %v489_v59  ;;  %v531_v11 = vmul.f32 %v524_v57, %v489_v59  ;;  %v532_v12 = vmul.f32 %v528_v58, %v489_v59  ;;  %v690_v56 = vld [vmem:[#allocation2] sm:$0xff]  ;;  %v699_v59 = vld [vmem:[#allocation3] sm:$0xff] }
 0x134   : > { %v621_v13 = vmul.f32 %v608_v61, %v583_v60  ;;  %v622_v14 = vmul.f32 %v612_v62, %v583_v60  ;;  %v623_v15 = vmul.f32 %v616_v63, %v583_v60  ;;  %v624_v16 = vmul.f32 %v620_v0, %v583_v60 }
 0x137   : > { %v535_v17 = vpop.permute.xlu0 %534  ;;  %v631_v18 = vpop.permute.xlu1 %630 }
 0x138   : > { %v573_v19 = vmul.f32 %v560_v1, %v535_v17  ;;  %v574_v20 = vmul.f32 %v564_v2, %v535_v17  ;;  %v575_v23 = vmul.f32 %v568_v3, %v535_v17  ;;  %v576_v24 = vmul.f32 %v572_v4, %v535_v17 }
 0x139   : > { %v669_v25 = vmul.f32 %v656_v5, %v631_v18  ;;  %v670_v26 = vmul.f32 %v660_v6, %v631_v18  ;;  %v671_v27 = vmul.f32 %v664_v7, %v631_v18  ;;  %v672_v28 = vmul.f32 %v668_v8, %v631_v18 }
 0x13a   : > { %v577_v29 = vadd.f32 %v573_v19, %v529_v9  ;;  %v578_v30 = vadd.f32 %v574_v20, %v530_v10  ;;  %v579_v31 = vadd.f32 %v575_v23, %v531_v11  ;;  %v580_v32 = vadd.f32 %v576_v24, %v532_v12 }
 0x13c   : > { %v625_v33 = vadd.f32 %v621_v13, %v577_v29  ;;  %v626_v34 = vadd.f32 %v622_v14, %v578_v30  ;;  %v627_v35 = vadd.f32 %v623_v15, %v579_v31  ;;  %v628_v36 = vadd.f32 %v624_v16, %v580_v32  ;;  %v680_v37 = vpop.permute.xlu1 %679 }
 0x13e   : > { %v673_v38 = vadd.f32 %v669_v25, %v625_v33  ;;  %v674_v39 = vadd.f32 %v670_v26, %v626_v34  ;;  %v675_v40 = vadd.f32 %v671_v27, %v627_v35  ;;  %v676_v41 = vadd.f32 %v672_v28, %v628_v36 }
 0x140   : > { %v682_v42 = vadd.f32 %v680_v37, %v673_v38  ;;  %v683_v43 = vadd.f32 %v680_v37, %v674_v39  ;;  %v684_v44 = vadd.f32 %v680_v37, %v675_v40  ;;  %v685_v45 = vadd.f32 %v680_v37, %v676_v41 }
 0x142   : > { %v691_v46 = vadd.f32 %v684_v44, %v682_v42  ;;  %v692_v47 = vadd.f32 %v685_v45, %v683_v43  ;;  %v686_v48 = vmul.f32 %v682_v42, %v682_v42  ;;  %v687_v49 = vmul.f32 %v683_v43, %v683_v43 }
 0x143   : > { %v688_v50 = vmul.f32 %v684_v44, %v684_v44  ;;  %v689_v51 = vmul.f32 %v685_v45, %v685_v45 }
 0x144   : > { %v693_v52 = vadd.f32 %v692_v47, %v691_v46 }
 0x145   : > { %v700_v53 = vadd.f32 %v688_v50, %v686_v48  ;;  %v701_v54 = vadd.f32 %v689_v51, %v687_v49 }
 0x146   : > { %694 = vadd.xlane.f32.xlu0 %v693_v52 }
 0x147   : > { %v702_v55 = vadd.f32 %v701_v54, %v700_v53 }
 0x149   : > { %703 = vadd.xlane.f32.xlu1 %v702_v55 }
 0x1cf   : > { %v695_v57 = vpop.xlane.xlu0 %694 }
 0x1d0   : > { %v696_v58 = vadd.f32 %v695_v57, %v690_v56 }
 0x1d2   : > { %698 = vst.msk [vmem:[#allocation2] sm:$0xff] %vm697_vm3, %v696_v58  ;;  %v704_v60 = vpop.xlane.xlu1 %703 }
 0x1d3   : > { %v705_v61 = vadd.f32 %v704_v60, %v699_v59 }
 0x1d5   : > { %706 = vst.msk [vmem:[#allocation3] sm:$0xff] %vm697_vm3, %v705_v61 }
 0x1d6 PF: > { %p1425_p7 = scmp.ne.s32.totalorder %s1519_s21, 1 }
 0x1d8   : > { %709 = sbr.rel (%p1425_p7) target bundleno = 820 (0x334), region = 72 }
 0x1dd   : > { %v710_v62 = vld [vmem:[%s1913_s9] sm:$0xff]  ;;  %v1535_v63 = vmov 2   ;;  %v1536_v0 = vmov 0   ;;  %v1537_v2 = vmov 3   ;;  %v1538_v4 = vmov 1   ;;  %v917_v5 = vld [vmem:[%s1909_s5 + $0x8] sm:$0xff] }
 0x1de   : > { %1483 = vset.pattern.permute.xlu1 %v1535_v63  ;;  %1482 = vset.pattern.permute.xlu0 %v1536_v0  ;;  %v916_v1 = vld [vmem:[%s1909_s5] sm:$0xff]  ;;  %v1539_v6 = vmov 4   ;;  %v1540_v7 = vmov 6   ;;  %v1541_v8 = vmov 7   ;;  %v1542_v9 = vmov 5   ;;  %v919_v11 = vld [vmem:[%s1910_s6 + $0x8] sm:$0xff] }
 0x1df   : > { %808 = vperm.xlu1 %1483, %v710_v62   ;;  %714 = vperm.xlu0 %1482, %v710_v62   ;;  %v711_v3 = vld [vmem:[%s1914_s10] sm:$0xff]  ;;  %v719_v12 = vlaneseq  ;;  %vm1274_vm4 = vcmask 7168  }
 0x1e0   : > { %v918_v10 = vld [vmem:[%s1910_s6] sm:$0xff] }
 0x1e1   : > { %v720_v13 = vshrl.u32 %v719_v12, 7 }
 0x1e3   : > { %1484 = vset.pattern.permute.xlu1 %v1537_v2  ;;  %922 = vperm.xlu0 %1482, %v916_v1   ;;  %v1703_v14 = vsub.s32 0, %v720_v13  ;;  %v1705_v15 = vsub.s32 4, %v720_v13  ;;  %v1707_v16 = vsub.s32 1, %v720_v13  ;;  %v1709_v17 = vsub.s32 5, %v720_v13 }
 0x1e4   : > { %856 = vperm.xlu1 %1484, %v710_v62   ;;  %v1711_v18 = vsub.s32 2, %v720_v13  ;;  %v1713_v19 = vsub.s32 6, %v720_v13  ;;  %v1723_v28 = vsub.s32 3, %v720_v13  ;;  %v1725_v29 = vsub.s32 7, %v720_v13 }
 0x1e5   : > { %v722_v23 = vrot.slane %v1654_v21, %v1703_v14  ;;  %v726_v24 = vrot.slane %v1654_v21, %v1705_v15  ;;  %v730_v25 = vrot.slane %v1659_v22, %v1703_v14  ;;  %v734_v26 = vrot.slane %v1659_v22, %v1705_v15 }
 0x1e6   : > { %v766_v30 = vrot.slane %v1654_v21, %v1707_v16  ;;  %v770_v31 = vrot.slane %v1654_v21, %v1709_v17  ;;  %v774_v32 = vrot.slane %v1659_v22, %v1707_v16  ;;  %v778_v33 = vrot.slane %v1659_v22, %v1709_v17 }
 0x1e7   : > { %1486 = vset.pattern.permute.xlu0 %v1538_v4  ;;  %v814_v34 = vrot.slane %v1654_v21, %v1711_v18  ;;  %v818_v35 = vrot.slane %v1654_v21, %v1713_v19  ;;  %v822_v36 = vrot.slane %v1659_v22, %v1711_v18  ;;  %v826_v37 = vrot.slane %v1659_v22, %v1713_v19 }
 0x1e8   : > { %1485 = vset.pattern.permute.xlu1 %v1536_v0  ;;  %760 = vperm.xlu0 %1486, %v710_v62   ;;  %v742_v38 = vrot.slane %v722_v23, %v1703_v14  ;;  %v746_v39 = vrot.slane %v726_v24, %v1703_v14  ;;  %v750_v40 = vrot.slane %v730_v25, %v1703_v14 }
 0x1e9   : > { %905 = vperm.xlu1 %1485, %v711_v3   ;;  %v754_v41 = vrot.slane %v734_v26, %v1703_v14  ;;  %v862_v43 = vrot.slane %v1654_v21, %v1723_v28  ;;  %v866_v44 = vrot.slane %v1654_v21, %v1725_v29  ;;  %v870_v45 = vrot.slane %v1659_v22, %v1723_v28 }
 0x1ea   : > { %v874_v46 = vrot.slane %v1659_v22, %v1725_v29  ;;  %v786_v48 = vrot.slane %v766_v30, %v1707_v16  ;;  %v790_v49 = vrot.slane %v770_v31, %v1707_v16  ;;  %v794_v50 = vrot.slane %v774_v32, %v1707_v16 }
 0x1eb   : > { %v798_v51 = vrot.slane %v778_v33, %v1707_v16  ;;  %v834_v52 = vrot.slane %v814_v34, %v1711_v18  ;;  %v838_v53 = vrot.slane %v818_v35, %v1711_v18  ;;  %v842_v21 = vrot.slane %v822_v36, %v1711_v18 }
 0x1ec   : > { %959 = vperm.xlu0 %1486, %v917_v5   ;;  %v846_v54 = vrot.slane %v826_v37, %v1711_v18  ;;  %v882_v58 = vrot.slane %v862_v43, %v1723_v28  ;;  %v886_v59 = vrot.slane %v866_v44, %v1723_v28  ;;  %v890_v60 = vrot.slane %v870_v45, %v1723_v28 }
 0x1ed   : > { %927 = vperm.xlu1 %1485, %v917_v5   ;;  %v894_v61 = vrot.slane %v874_v46, %v1723_v28 }
 0x1f0   : > { %1489 = vset.pattern.permute.xlu0 %v1537_v2 }
 0x1f1   : > { %1487 = vset.pattern.permute.xlu1 %v1538_v4  ;;  %1035 = vperm.xlu0 %1489, %v916_v1  }
 0x1f2   : > { %955 = vperm.xlu1 %1487, %v916_v1  }
 0x1f5   : > { %1492 = vset.pattern.permute.xlu0 %v1539_v6 }
 0x1f6   : > { %1488 = vset.pattern.permute.xlu1 %v1535_v63  ;;  %1079 = vperm.xlu0 %1492, %v917_v5  }
 0x1f7   : > { %995 = vperm.xlu1 %1488, %v916_v1  }
 0x1fa   : > { %1494 = vset.pattern.permute.xlu0 %v1540_v7 }
 0x1fb   : > { %999 = vperm.xlu1 %1488, %v917_v5   ;;  %1155 = vperm.xlu0 %1494, %v916_v1  }
 0x1ff   : > { %1490 = vset.pattern.permute.xlu1 %v1537_v2  ;;  %1497 = vset.pattern.permute.xlu0 %v1541_v8 }
 0x200   : > { %1039 = vperm.xlu1 %1490, %v917_v5   ;;  %1199 = vperm.xlu0 %1497, %v917_v5  }
 0x204   : > { %1491 = vset.pattern.permute.xlu1 %v1539_v6  ;;  %1499 = vset.pattern.permute.xlu0 %v1536_v0 }
 0x205   : > { %1075 = vperm.xlu1 %1491, %v916_v1  }
 0x209   : > { %1493 = vset.pattern.permute.xlu1 %v1542_v9 }
 0x20a   : > { %1115 = vperm.xlu1 %1493, %v916_v1  }
 0x20e   : > { %1119 = vperm.xlu1 %1493, %v917_v5  }
 0x212   : > { %1495 = vset.pattern.permute.xlu1 %v1540_v7 }
 0x213   : > { %1159 = vperm.xlu1 %1495, %v917_v5  }
 0x217   : > { %1496 = vset.pattern.permute.xlu1 %v1541_v8 }
 0x218   : > { %1195 = vperm.xlu1 %1496, %v916_v1  }
 0x21c   : > { %1498 = vset.pattern.permute.xlu1 %v1536_v0 }
 0x21d   : > { %1236 = vperm.xlu1 %1498, %v918_v10  }
 0x221   : > { %1241 = vperm.xlu1 %1498, %v919_v11  }
 0x25a   : > { %v809_v20 = vpop.permute.xlu1 %808  ;;  %v715_v27 = vpop.permute.xlu0 %714 }
 0x25b   : > { %v755_v55 = vmul.f32 %v742_v38, %v715_v27  ;;  %v756_v56 = vmul.f32 %v746_v39, %v715_v27  ;;  %v757_v22 = vmul.f32 %v750_v40, %v715_v27  ;;  %v758_v57 = vmul.f32 %v754_v41, %v715_v27 }
 0x25c   : > { %v847_v4 = vmul.f32 %v834_v52, %v809_v20  ;;  %v848_v5 = vmul.f32 %v838_v53, %v809_v20  ;;  %v849_v6 = vmul.f32 %v842_v21, %v809_v20  ;;  %v850_v7 = vmul.f32 %v846_v54, %v809_v20 }
 0x25e   : > { %v1747_v42 = vpop.permute.xlu0 %922 }
 0x25f   : > { %v857_v47 = vpop.permute.xlu1 %856 }
 0x260   : > { %v895_v12 = vmul.f32 %v882_v58, %v857_v47  ;;  %v896_v13 = vmul.f32 %v886_v59, %v857_v47  ;;  %v897_v23 = vmul.f32 %v890_v60, %v857_v47  ;;  %v898_v24 = vmul.f32 %v894_v61, %v857_v47 }
 0x263   : > { %v761_v62 = vpop.permute.xlu0 %760 }
 0x264   : > { %v799_v63 = vmul.f32 %v786_v48, %v761_v62  ;;  %v800_v0 = vmul.f32 %v790_v49, %v761_v62  ;;  %v801_v1 = vmul.f32 %v794_v50, %v761_v62  ;;  %v802_v2 = vmul.f32 %v798_v51, %v761_v62  ;;  %v906_v3 = vpop.permute.xlu1 %905 }
 0x266   : > { %v803_v8 = vadd.f32 %v799_v63, %v755_v55  ;;  %v804_v9 = vadd.f32 %v800_v0, %v756_v56  ;;  %v805_v10 = vadd.f32 %v801_v1, %v757_v22  ;;  %v806_v11 = vadd.f32 %v802_v2, %v758_v57 }
 0x267   : > { %v960_v51 = vpop.permute.xlu0 %959 }
 0x268   : > { %v851_v25 = vadd.f32 %v847_v4, %v803_v8  ;;  %v852_v26 = vadd.f32 %v848_v5, %v804_v9  ;;  %v853_v27 = vadd.f32 %v849_v6, %v805_v10  ;;  %v854_v30 = vadd.f32 %v850_v7, %v806_v11  ;;  %v928_v31 = vpop.permute.xlu1 %927 }
 0x26a   : > { %v899_v32 = vadd.f32 %v895_v12, %v851_v25  ;;  %v900_v33 = vadd.f32 %v896_v13, %v852_v26  ;;  %v901_v34 = vadd.f32 %v897_v23, %v853_v27  ;;  %v902_v35 = vadd.f32 %v898_v24, %v854_v30 }
 0x26c   : > { %v908_v36 = vadd.f32 %v906_v3, %v899_v32  ;;  %v909_v37 = vadd.f32 %v906_v3, %v900_v33  ;;  %v910_v20 = vadd.f32 %v906_v3, %v901_v34  ;;  %v911_v38 = vadd.f32 %v906_v3, %v902_v35 }
 0x26d   : > { %v956_v39 = vpop.permute.xlu1 %955 }
 0x26e   : > { %v1769_v40 = vmax.f32 %v908_v36, 0.0  ;;  %v1771_v41 = vmax.f32 %v909_v37, 0.0  ;;  %v1773_v43 = vmax.f32 %v910_v20, 0.0  ;;  %v1775_v44 = vmax.f32 %v911_v38, 0.0 }
 0x270   : > { %v933_v45 = vrot.slane %v1769_v40, %v1703_v14  ;;  %v937_v46 = vrot.slane %v1771_v41, %v1703_v14  ;;  %v941_v47 = vrot.slane %v1773_v43, %v1703_v14  ;;  %v965_v48 = vrot.slane %v1769_v40, %v1707_v16 }
 0x271   : > { %v969_v49 = vrot.slane %v1771_v41, %v1707_v16  ;;  %v973_v50 = vrot.slane %v1773_v43, %v1707_v16  ;;  %v945_v52 = vrot.slane %v1775_v44, %v1703_v14  ;;  %v977_v53 = vrot.slane %v1775_v44, %v1707_v16  ;;  %v1036_v14 = vpop.permute.xlu0 %1035 }
 0x272   : > { %v996_v21 = vpop.permute.xlu1 %995  ;;  %v948_v54 = vmul.f32 %v933_v45, %v928_v31  ;;  %v949_v55 = vmul.f32 %v937_v46, %v928_v31  ;;  %v980_v56 = vmul.f32 %v965_v48, %v960_v51  ;;  %v952_v57 = vmul.f32 %v941_v47, %v928_v31 }
 0x273   : > { %v981_v22 = vmul.f32 %v969_v49, %v960_v51  ;;  %v984_v58 = vmul.f32 %v973_v50, %v960_v51  ;;  %v953_v59 = vmul.f32 %v945_v52, %v928_v31  ;;  %v985_v60 = vmul.f32 %v977_v53, %v960_v51 }
 0x274   : > { %v946_v62 = vmul.f32 %v933_v45, %v1747_v42  ;;  %v947_v63 = vmul.f32 %v937_v46, %v1747_v42  ;;  %v950_v0 = vmul.f32 %v941_v47, %v1747_v42  ;;  %v988_v1 = vadd.f32 %v980_v56, %v948_v54 }
 0x275   : > { %v989_v2 = vadd.f32 %v981_v22, %v949_v55  ;;  %v951_v16 = vmul.f32 %v945_v52, %v1747_v42  ;;  %v978_v3 = vmul.f32 %v965_v48, %v956_v39  ;;  %v992_v4 = vadd.f32 %v984_v58, %v952_v57  ;;  %v1080_v35 = vpop.permute.xlu0 %1079 }
 0x276   : > { %v1000_v61 = vpop.permute.xlu1 %999  ;;  %v979_v5 = vmul.f32 %v969_v49, %v956_v39  ;;  %v982_v6 = vmul.f32 %v973_v50, %v956_v39  ;;  %v983_v7 = vmul.f32 %v977_v53, %v956_v39  ;;  %v993_v8 = vadd.f32 %v985_v60, %v953_v59 }
 0x277   : > { %v1045_v9 = vrot.slane %v1769_v40, %v1723_v28  ;;  %v1049_v10 = vrot.slane %v1771_v41, %v1723_v28  ;;  %v1053_v11 = vrot.slane %v1773_v43, %v1723_v28  ;;  %v1005_v12 = vrot.slane %v1769_v40, %v1711_v18 }
 0x278   : > { %v1009_v42 = vrot.slane %v1771_v41, %v1711_v18  ;;  %v1013_v13 = vrot.slane %v1773_v43, %v1711_v18  ;;  %v1017_v23 = vrot.slane %v1775_v44, %v1711_v18  ;;  %v986_v25 = vadd.f32 %v978_v3, %v946_v62 }
 0x279   : > { %v1057_v26 = vrot.slane %v1775_v44, %v1723_v28  ;;  %v1085_v27 = vrot.slane %v1769_v40, %v1705_v15  ;;  %v1089_v30 = vrot.slane %v1771_v41, %v1705_v15  ;;  %v987_v31 = vadd.f32 %v979_v5, %v947_v63  ;;  %v1156_v58 = vpop.permute.xlu0 %1155 }
 0x27a   : > { %v990_v32 = vadd.f32 %v982_v6, %v950_v0  ;;  %v991_v33 = vadd.f32 %v983_v7, %v951_v16  ;;  %v1093_v34 = vrot.slane %v1773_v43, %v1705_v15  ;;  %v1097_v18 = vrot.slane %v1775_v44, %v1705_v15 }
 0x27b   : > { %v1040_v24 = vpop.permute.xlu1 %1039  ;;  %v1018_v36 = vmul.f32 %v1005_v12, %v996_v21  ;;  %v1019_v37 = vmul.f32 %v1009_v42, %v996_v21  ;;  %v1022_v20 = vmul.f32 %v1013_v13, %v996_v21  ;;  %v1058_v28 = vmul.f32 %v1045_v9, %v1036_v14 }
 0x27c   : > { %v1059_v38 = vmul.f32 %v1049_v10, %v1036_v14  ;;  %v1062_v39 = vmul.f32 %v1053_v11, %v1036_v14  ;;  %v1023_v45 = vmul.f32 %v1017_v23, %v996_v21  ;;  %v1063_v46 = vmul.f32 %v1057_v26, %v1036_v14 }
 0x27d   : > { %v1821_v47 = vmul.f32 %v1085_v27, %v1080_v35  ;;  %v1823_v48 = vmul.f32 %v1089_v30, %v1080_v35  ;;  %v1020_v49 = vmul.f32 %v1005_v12, %v1000_v61  ;;  %v1825_v51 = vmul.f32 %v1093_v34, %v1080_v35 }
 0x27e   : > { %v1021_v52 = vmul.f32 %v1009_v42, %v1000_v61  ;;  %v1024_v53 = vmul.f32 %v1013_v13, %v1000_v61  ;;  %v1025_v54 = vmul.f32 %v1017_v23, %v1000_v61  ;;  %v1827_v15 = vmul.f32 %v1097_v18, %v1080_v35 }
 0x27f   : > { %v1026_v55 = vadd.f32 %v1018_v36, %v986_v25  ;;  %v1027_v56 = vadd.f32 %v1019_v37, %v987_v31  ;;  %v1030_v22 = vadd.f32 %v1022_v20, %v990_v32  ;;  %v1031_v57 = vadd.f32 %v1023_v45, %v991_v33 }
 0x280   : > { %v1076_v50 = vpop.permute.xlu1 %1075  ;;  %v1060_v21 = vmul.f32 %v1045_v9, %v1040_v24  ;;  %v1061_v59 = vmul.f32 %v1049_v10, %v1040_v24  ;;  %v1064_v60 = vmul.f32 %v1053_v11, %v1040_v24  ;;  %v1028_v62 = vadd.f32 %v1020_v49, %v988_v1 }
 0x281   : > { %v1165_v63 = vrot.slane %v1769_v40, %v1713_v19  ;;  %v1169_v0 = vrot.slane %v1771_v41, %v1713_v19  ;;  %v1173_v61 = vrot.slane %v1773_v43, %v1713_v19  ;;  %v1029_v14 = vadd.f32 %v1021_v52, %v989_v2 }
 0x282   : > { %v1032_v16 = vadd.f32 %v1024_v53, %v992_v4  ;;  %v1033_v3 = vadd.f32 %v1025_v54, %v993_v8  ;;  %v1177_v5 = vrot.slane %v1775_v44, %v1713_v19  ;;  %v1065_v1 = vmul.f32 %v1057_v26, %v1040_v24 }
 0x283   : > { %v1178_v7 = vmul.f32 %v1165_v63, %v1156_v58  ;;  %v1179_v9 = vmul.f32 %v1169_v0, %v1156_v58  ;;  %v1182_v10 = vmul.f32 %v1173_v61, %v1156_v58  ;;  %v1068_v12 = vadd.f32 %v1060_v21, %v1028_v62 }
 0x284   : > { %v1183_v11 = vmul.f32 %v1177_v5, %v1156_v58  ;;  %v1069_v42 = vadd.f32 %v1061_v59, %v1029_v14  ;;  %v1072_v13 = vadd.f32 %v1064_v60, %v1032_v16  ;;  %v1098_v23 = vmul.f32 %v1085_v27, %v1076_v50 }
 0x285   : > { %v1116_v6 = vpop.permute.xlu1 %1115  ;;  %v1099_v25 = vmul.f32 %v1089_v30, %v1076_v50  ;;  %v1102_v31 = vmul.f32 %v1093_v34, %v1076_v50  ;;  %v1103_v32 = vmul.f32 %v1097_v18, %v1076_v50  ;;  %v1125_v2 = vrot.slane %v1769_v40, %v1709_v17 }
 0x286   : > { %v1129_v4 = vrot.slane %v1771_v41, %v1709_v17  ;;  %v1133_v19 = vrot.slane %v1773_v43, %v1709_v17  ;;  %v1137_v8 = vrot.slane %v1775_v44, %v1709_v17  ;;  %v1066_v26 = vadd.f32 %v1058_v28, %v1026_v55 }
 0x287   : > { %v1067_v33 = vadd.f32 %v1059_v38, %v1027_v56  ;;  %v1070_v35 = vadd.f32 %v1062_v39, %v1030_v22  ;;  %v1071_v27 = vadd.f32 %v1063_v46, %v1031_v57  ;;  %v1138_v30 = vmul.f32 %v1125_v2, %v1116_v6 }
 0x288   : > { %v1139_v34 = vmul.f32 %v1129_v4, %v1116_v6  ;;  %v1142_v18 = vmul.f32 %v1133_v19, %v1116_v6  ;;  %v1143_v36 = vmul.f32 %v1137_v8, %v1116_v6  ;;  %v1073_v37 = vadd.f32 %v1065_v1, %v1033_v3 }
 0x289   : > { %v1120_v24 = vpop.permute.xlu1 %1119  ;;  %v1205_v20 = vrot.slane %v1769_v40, %v1725_v29  ;;  %v1209_v45 = vrot.slane %v1771_v41, %v1725_v29  ;;  %v1213_v49 = vrot.slane %v1773_v43, %v1725_v29  ;;  %v1106_v17 = vadd.f32 %v1098_v23, %v1066_v26 }
 0x28a   : > { %v1107_v50 = vadd.f32 %v1099_v25, %v1067_v33  ;;  %v1110_v28 = vadd.f32 %v1102_v31, %v1070_v35  ;;  %v1111_v38 = vadd.f32 %v1103_v32, %v1071_v27  ;;  %v1217_v39 = vrot.slane %v1775_v44, %v1725_v29 }
 0x28b   : > { %v1140_v46 = vmul.f32 %v1125_v2, %v1120_v24  ;;  %v1141_v52 = vmul.f32 %v1129_v4, %v1120_v24  ;;  %v1144_v53 = vmul.f32 %v1133_v19, %v1120_v24  ;;  %v1146_v55 = vadd.f32 %v1138_v30, %v1106_v17 }
 0x28c   : > { %v1147_v56 = vadd.f32 %v1139_v34, %v1107_v50  ;;  %v1150_v40 = vadd.f32 %v1142_v18, %v1110_v28  ;;  %v1151_v22 = vadd.f32 %v1143_v36, %v1111_v38  ;;  %v1108_v41 = vadd.f32 %v1821_v47, %v1068_v12 }
 0x28d   : > { %v1109_v57 = vadd.f32 %v1823_v48, %v1069_v42  ;;  %v1112_v43 = vadd.f32 %v1825_v51, %v1072_v13  ;;  %v1113_v58 = vadd.f32 %v1827_v15, %v1073_v37  ;;  %v1145_v21 = vmul.f32 %v1137_v8, %v1120_v24  ;;  %v1200_v51 = vpop.permute.xlu0 %1199 }
 0x28e   : > { %v1160_v54 = vpop.permute.xlu1 %1159  ;;  %v1148_v44 = vadd.f32 %v1140_v46, %v1108_v41  ;;  %v1186_v6 = vadd.f32 %v1178_v7, %v1146_v55  ;;  %v1187_v1 = vadd.f32 %v1179_v9, %v1147_v56  ;;  %v1190_v23 = vadd.f32 %v1182_v10, %v1150_v40 }
 0x28f   : > { %v1180_v59 = vmul.f32 %v1165_v63, %v1160_v54  ;;  %v1181_v60 = vmul.f32 %v1169_v0, %v1160_v54  ;;  %v1184_v29 = vmul.f32 %v1173_v61, %v1160_v54  ;;  %v1149_v62 = vadd.f32 %v1141_v52, %v1109_v57 }
 0x290   : > { %v1152_v14 = vadd.f32 %v1144_v53, %v1112_v43  ;;  %v1185_v16 = vmul.f32 %v1177_v5, %v1160_v54  ;;  %v1191_v25 = vadd.f32 %v1183_v11, %v1151_v22  ;;  %v1153_v13 = vadd.f32 %v1145_v21, %v1113_v58 }
 0x291   : > { %v1188_v15 = vadd.f32 %v1180_v59, %v1148_v44  ;;  %v1189_v31 = vadd.f32 %v1181_v60, %v1149_v62  ;;  %v1220_v4 = vmul.f32 %v1205_v20, %v1200_v51  ;;  %v1221_v5 = vmul.f32 %v1209_v45, %v1200_v51  ;;  %v1260_v59 = vld [vmem:[#allocation4] sm:$0xff]  ;;  %v1277_v44 = vld [vmem:[#allocation5] sm:$0xff]  ;;  %v1261_v62 = vld [vmem:[#allocation4 + $0x8] sm:$0xff] }
 0x292   : > { %v1192_v63 = vadd.f32 %v1184_v29, %v1152_v14  ;;  %v1224_v19 = vmul.f32 %v1213_v49, %v1200_v51  ;;  %v1193_v7 = vadd.f32 %v1185_v16, %v1153_v13  ;;  %v1225_v26 = vmul.f32 %v1217_v39, %v1200_v51 }
 0x293   : > { %v1196_v3 = vpop.permute.xlu1 %1195  ;;  %v1228_v33 = vadd.f32 %v1220_v4, %v1188_v15  ;;  %v1229_v35 = vadd.f32 %v1221_v5, %v1189_v31 }
 0x294   : > { %v1218_v47 = vmul.f32 %v1205_v20, %v1196_v3  ;;  %v1219_v12 = vmul.f32 %v1209_v45, %v1196_v3  ;;  %v1222_v48 = vmul.f32 %v1213_v49, %v1196_v3  ;;  %v1223_v42 = vmul.f32 %v1217_v39, %v1196_v3 }
 0x295   : > { %v1232_v27 = vadd.f32 %v1224_v19, %v1192_v63  ;;  %v1233_v20 = vadd.f32 %v1225_v26, %v1193_v7 }
 0x296   : > { %v1226_v0 = vadd.f32 %v1218_v47, %v1186_v6  ;;  %v1227_v61 = vadd.f32 %v1219_v12, %v1187_v1  ;;  %v1230_v32 = vadd.f32 %v1222_v48, %v1190_v23  ;;  %v1231_v2 = vadd.f32 %v1223_v42, %v1191_v25  ;;  %v1278_v1 = vld [vmem:[#allocation5 + $0x8] sm:$0xff] }
 0x298   : > { %v1237_v9 = vpop.permute.xlu1 %1236 }
 0x299   : > { %v1244_v10 = vadd.f32 %v1237_v9, %v1226_v0  ;;  %v1245_v11 = vadd.f32 %v1237_v9, %v1227_v61  ;;  %v1248_v8 = vadd.f32 %v1237_v9, %v1230_v32  ;;  %v1249_v24 = vadd.f32 %v1237_v9, %v1231_v2 }
 0x29b   : > { %v1262_v30 = vadd.f32 %v1248_v8, %v1244_v10  ;;  %v1263_v34 = vadd.f32 %v1249_v24, %v1245_v11  ;;  %v1252_v18 = vmul.f32 %v1244_v10, %v1244_v10  ;;  %v1253_v36 = vmul.f32 %v1245_v11, %v1245_v11 }
 0x29c   : > { %v1242_v37 = vpop.permute.xlu1 %1241  ;;  %v1256_v17 = vmul.f32 %v1248_v8, %v1248_v8  ;;  %v1257_v50 = vmul.f32 %v1249_v24, %v1249_v24 }
 0x29d   : > { %v1266_v45 = vadd.f32 %v1263_v34, %v1262_v30  ;;  %v1246_v49 = vadd.f32 %v1242_v37, %v1228_v33  ;;  %v1247_v28 = vadd.f32 %v1242_v37, %v1229_v35  ;;  %v1250_v38 = vadd.f32 %v1242_v37, %v1232_v27 }
 0x29e   : > { %v1279_v46 = vadd.f32 %v1256_v17, %v1252_v18  ;;  %v1280_v52 = vadd.f32 %v1257_v50, %v1253_v36  ;;  %v1251_v53 = vadd.f32 %v1242_v37, %v1233_v20 }
 0x29f   : > { %1267 = vadd.xlane.f32.xlu0 %v1266_v45  ;;  %v1264_v39 = vadd.f32 %v1250_v38, %v1246_v49  ;;  %v1254_v54 = vmul.f32 %v1246_v49, %v1246_v49  ;;  %v1255_v55 = vmul.f32 %v1247_v28, %v1247_v28  ;;  %v1258_v56 = vmul.f32 %v1250_v38, %v1250_v38 }
 0x2a0   : > { %v1265_v40 = vadd.f32 %v1251_v53, %v1247_v28  ;;  %v1259_v22 = vmul.f32 %v1251_v53, %v1251_v53  ;;  %v1283_v41 = vadd.f32 %v1280_v52, %v1279_v46 }
 0x2a1   : > { %v1281_v57 = vadd.f32 %v1258_v56, %v1254_v54 }
 0x2a2   : > { %v1269_v43 = vadd.f32 %v1265_v40, %v1264_v39  ;;  %v1282_v58 = vadd.f32 %v1259_v22, %v1255_v55 }
 0x2a3   : > { %1284 = vadd.xlane.f32.xlu0 %v1283_v41 }
 0x2a4   : > { %1270 = vadd.xlane.f32.xlu1 %v1269_v43  ;;  %v1286_v21 = vadd.f32 %v1282_v58, %v1281_v57 }
 0x2a7   : > { %1287 = vadd.xlane.f32.xlu0 %v1286_v21 }
 0x328   : > { %v1268_v60 = vpop.xlane.xlu0 %1267 }
 0x329   : > { %v1272_v29 = vadd.f32 %v1268_v60, %v1260_v59 }
 0x32b   : > { %1275 = vst.msk [vmem:[#allocation4] sm:$0xff] %vm1274_vm4, %v1272_v29 }
 0x32c   : > { %v1285_v14 = vpop.xlane.xlu0 %1284 }
 0x32d   : > { %v1271_v16 = vpop.xlane.xlu1 %1270  ;;  %v1289_v3 = vadd.f32 %v1285_v14, %v1277_v44 }
 0x32e   : > { %v1273_v6 = vadd.f32 %v1271_v16, %v1261_v62 }
 0x32f   : > { %1291 = vst.msk [vmem:[#allocation5] sm:$0xff] %vm1274_vm4, %v1289_v3 }
 0x330   : > { %1276 = vst.msk [vmem:[#allocation4 + $0x8] sm:$0xff] %vm1274_vm4, %v1273_v6  ;;  %v1288_v23 = vpop.xlane.xlu0 %1287 }
 0x331   : > { %v1290_v25 = vadd.f32 %v1288_v23, %v1278_v1 }
 0x333   : > { %1292 = vst.msk [vmem:[#allocation5 + $0x8] sm:$0xff] %vm1274_vm4, %v1290_v25 }
 0x334 PF: > { %1298 = sbr.rel (!%p447_p5) target bundleno = 978 (0x3d2), region = 76  ;;  %v1299_v47 = vld [vmem:[#allocation4] sm:$0xff] (%p447_p5)  ;;  %v1543_v48 = vmov (%p447_p5), 0   ;;  %v1338_v9 = vld [vmem:[%s1910_s6] sm:$0xff] (%p447_p5)  ;;  %v1339_v10 = vld [vmem:[%s1910_s6 + $0x8] sm:$0xff] (%p447_p5)  ;;  %vm1348_vm5 = vcmask (%p447_p5), 7168  }
 0x335   : > { %1500 = vset.pattern.permute.xlu0 (%p447_p5), %v1543_v48  ;;  %v1301_v42 = vmul.f32 (%p447_p5), 0.001953125, %v1299_v47  ;;  %v1311_v11 = vld [vmem:[%s1911_s7] sm:$0xff] (%p447_p5)  ;;  %v1312_v24 = vld [vmem:[%s1911_s7 + $0x8] sm:$0xff] (%p447_p5)  ;;  %vm1335_vm6 = vcmask (%p447_p5), 64512  }
 0x336   : > { %v1303_v12 = vld [vmem:[#allocation5] sm:$0xff] (%p447_p5)  ;;  %v1345_v36 = vld [vmem:[%s1912_s8 + $0x8] sm:$0xff] (%p447_p5) }
 0x337   : > { %v1305_v51 = vmul.f32 (%p447_p5), 0.001953125, %v1303_v12  ;;  %v1300_v13 = vld [vmem:[#allocation4 + $0x8] sm:$0xff] (%p447_p5)  ;;  %v1307_v63 = vmul.f32 (%p447_p5), %v1301_v42, %v1301_v42  ;;  %v1340_v8 = vsub.f32 (%p447_p5), %v1338_v9, %v1301_v42  ;;  %v1344_v30 = vld [vmem:[%s1912_s8] sm:$0xff] (%p447_p5)  ;;  %v1322_v28 = vld [vmem:[%s1909_s5 + $0x8] sm:$0xff] (%p447_p5) }
 0x338   : > { %v1302_v15 = vmul.f32 (%p447_p5), 0.001953125, %v1300_v13  ;;  %v1321_v20 = vld [vmem:[%s1909_s5] sm:$0xff] (%p447_p5) }
 0x339   : > { %v1309_v32 = vsub.f32 %v1305_v51, %v1307_v63 }
 0x33a   : > { %v1304_v31 = vld [vmem:[#allocation5 + $0x8] sm:$0xff]  ;;  %v1308_v61 = vmul.f32 %v1302_v15, %v1302_v15  ;;  %v1341_v33 = vsub.f32 %v1339_v10, %v1302_v15 }
 0x33b   : > { %v1306_v0 = vmul.f32 0.001953125, %v1304_v31  ;;  %v1313_v4 = vmax.f32 %v1309_v32, 0.0 }
 0x33d   : > { %v1310_v2 = vsub.f32 %v1306_v0, %v1308_v61  ;;  %v1315_v19 = vadd.f32 1e-05, %v1313_v4 }
 0x33f   : > { %v1314_v5 = vmax.f32 %v1310_v2, 0.0  ;;  %1501 = vrsqrt.f32 %v1315_v19 }
 0x341   : > { %v1316_v7 = vadd.f32 1e-05, %v1314_v5 }
 0x343   : > { %1503 = vrsqrt.f32 %v1316_v7 }
 0x34c   : > { %v1502_v26 = vpop.eup %1501 }
 0x34d   : > { %v1319_v27 = vmul.f32 %v1502_v26, %v1311_v11 }
 0x34f   : > { %1325 = vperm.xlu0 %1500, %v1319_v27   ;;  %v1342_v18 = vmul.f32 %v1340_v8, %v1319_v27 }
 0x350   : > { %v1504_v35 = vpop.eup %1503 }
 0x351   : > { %v1320_v34 = vmul.f32 %v1504_v35, %v1312_v24  ;;  %v1346_v17 = vadd.f32 %v1344_v30, %v1342_v18 }
 0x353   : > { %v1343_v37 = vmul.f32 %v1341_v33, %v1320_v34  ;;  %1349 = vst.msk [vmem:[%s1916_s12] sm:$0xff] %vm1348_vm5, %v1346_v17  ;;  %1330 = vperm.xlu0 %1500, %v1320_v34  }
 0x355   : > { %v1347_v50 = vadd.f32 %v1345_v36, %v1343_v37 }
 0x357   : > { %1350 = vst.msk [vmem:[%s1916_s12 + $0x8] sm:$0xff] %vm1348_vm5, %v1347_v50 }
 0x3ca   : > { %v1326_v45 = vpop.permute.xlu0 %1325 }
 0x3cb   : > { %v1333_v49 = vmul.f32 %v1326_v45, %v1321_v20 }
 0x3cd   : > { %1336 = vst.msk [vmem:[%s1915_s11] sm:$0xff] %vm1335_vm6, %v1333_v49 }
 0x3ce   : > { %v1331_v38 = vpop.permute.xlu0 %1330 }
 0x3cf   : > { %v1334_v46 = vmul.f32 %v1331_v38, %v1322_v28 }
 0x3d1   : > { %1337 = vst.msk [vmem:[%s1915_s11 + $0x8] sm:$0xff] %vm1335_vm6, %v1334_v46 }
 0x3d2 PF: > { %s23_s23 = sadd.s32 1, %s1527_s23   ;;  %s1917_s21 = smov %s1523_s22 }
 0x3d3   : > { %p20_p8 = scmp.ge.s32.totalorder %s23_s23, 4   ;;  %s1918_s22 = smov %s1920_s24 }
 0x3d5   :  { %22 = sbr.rel (!%p20_p8) target bundleno = 2 (0x2), region = 126 }

</bundles_post_ra>
